<compile_context>
chip_gen: v5e
topology: v5e:2x2
jax: 0.10.0
libtpu: 0.0.40
codegen_flags: <defaults>
</compile_context>

<pallas_src>
import functools

import jax
import jax.numpy as jnp
from jax.experimental import pallas as pl
from jax.experimental.pallas import tpu as pltpu


def _fused_head_kernel(x_ref, w1_ref, b1_ref, w234_ref, b234_ref,
                       w5_ref, b5_ref, o_ref, *, seg_len):
    """Fused 5x Conv1d(k=3, pad=1) + (ReLU x4, Sigmoid) head.

    x_ref:    (M, 3*Cin)   f32   im2col'd input rows, M = b_tile * seg_len
    w1_ref:   (3*Cin, F)   bf16  layer-1 weights, 3 taps folded into K
    b1_ref:   (1, F)       f32
    w234_ref: (3, 3, F, F) bf16  layers 2..4: [layer, tap, Cin, Cout]
    b234_ref: (3, F)       f32
    w5_ref:   (3, F, Cpad) bf16  output layer (Cout zero-padded to mult of 128)
    b5_ref:   (1, Cpad)    f32
    o_ref:    (M, Cpad)    bf16  sigmoid outputs (lane-dense)
    """
    M = x_ref.shape[0]

    # Segment-boundary masks (a tile may hold several length-seg_len segments).
    row = jax.lax.broadcasted_iota(jnp.int32, (M, 1), 0)
    local = row % seg_len
    not_first = local != 0                 # row is not the first of its segment
    not_last = local != (seg_len - 1)      # row is not the last of its segment

    def tap_prev(y):
        # out[i] += y[i-1] within each segment; 0 at segment starts.
        # (pltpu.roll wrap-around rows are exactly the masked rows.)
        return jnp.where(not_first, pltpu.roll(y, shift=1, axis=0), 0.0)

    def tap_next(y):
        # out[i] += y[i+1] within each segment; 0 at segment ends.
        return jnp.where(not_last, pltpu.roll(y, shift=M - 1, axis=0), 0.0)

    # ---- layer 1: im2col'd input -> one wide-K (K = 3*Cin) matmul ----
    acc = jnp.dot(x_ref[...].astype(jnp.bfloat16), w1_ref[...],
                  preferred_element_type=jnp.float32)
    h = jnp.maximum(acc + b1_ref[...], 0.0)            # (M, F) f32

    # ---- layers 2..4: one bf16 cast, three tap matmuls, f32 tap shifts ----
    for layer in range(3):
        h_b = h.astype(jnp.bfloat16)
        y0 = jnp.dot(h_b, w234_ref[layer, 0], preferred_element_type=jnp.float32)
        y1 = jnp.dot(h_b, w234_ref[layer, 1], preferred_element_type=jnp.float32)
        y2 = jnp.dot(h_b, w234_ref[layer, 2], preferred_element_type=jnp.float32)
        bias = b234_ref[pl.ds(layer, 1), :]             # (1, F)
        h = jnp.maximum(y1 + tap_prev(y0) + tap_next(y2) + bias, 0.0)

    # ---- output layer + sigmoid (Cout padded to 128 -> lane-dense store) ----
    h_b = h.astype(jnp.bfloat16)
    y0 = jnp.dot(h_b, w5_ref[0], preferred_element_type=jnp.float32)
    y1 = jnp.dot(h_b, w5_ref[1], preferred_element_type=jnp.float32)
    y2 = jnp.dot(h_b, w5_ref[2], preferred_element_type=jnp.float32)
    acc = y1 + tap_prev(y0) + tap_next(y2) + b5_ref[...]
    o_ref[...] = jax.nn.sigmoid(acc).astype(o_ref.dtype)


def _pick_b_tile(B, L, target_rows=1024):
    """Largest divisor of B keeping the per-step matmul M near target_rows.

    Capped at B//2 so the grid has >= 2 parallel steps (feeds both v7x
    TensorCores); (b_tile*L) must be a multiple of 8 for a legal sublane tile.
    """
    max_d = B // 2 if B >= 2 else B
    best = None
    for d in range(1, max_d + 1):
        if B % d == 0 and d * L <= target_rows and (d * L) % 8 == 0:
            best = d
    if best is None:
        # TODO(synk): pad L to a multiple of 8 (or add the L-tile halo axis)
        # instead of falling back to a single full-extent block.
        return B
    return best


def init_params(key, num_features_in, feature_size, num_anchors, num_classes):
    """PyTorch-default-style init: uniform +/- 1/sqrt(fan_in * k), k=3."""
    layer_dims = [
        (num_features_in, feature_size),
        (feature_size, feature_size),
        (feature_size, feature_size),
        (feature_size, feature_size),
        (feature_size, num_anchors * num_classes),
    ]
    params = []
    for cin, cout in layer_dims:
        key, kw, kb = jax.random.split(key, 3)
        bound = 1.0 / float(jnp.sqrt(cin * 3.0))
        w = jax.random.uniform(kw, (3, cin, cout), jnp.float32, -bound, bound)
        b = jax.random.uniform(kb, (1, cout), jnp.float32, -bound, bound)
        params.append((w, b))
    return params


def classification_model(x_ncl, params, num_anchors, num_classes):
    """Forward pass matching the PyTorch module.

    x_ncl: (B, C_in, L)  (PyTorch NCL layout)
    returns: (B, L * num_anchors, num_classes)
    """
    B, Cin, L = x_ncl.shape
    F = params[0][0].shape[2]
    Cout = params[4][0].shape[2]
    assert Cout == num_anchors * num_classes
    cpad = pl.cdiv(Cout, 128) * 128

    # Channels-last + layer-1 im2col in XLA: rows are [x[l-1], x[l], x[l+1]],
    # 'same' padding handled by the zero-pad; batch folded into the M dim.
    x_blc = jnp.transpose(x_ncl, (0, 2, 1))            # (B, L, Cin)
    xp = jnp.pad(x_blc, ((0, 0), (1, 1), (0, 0)))       # (B, L+2, Cin)
    x_win = jnp.concatenate(
        [xp[:, 0:L, :], xp[:, 1:L + 1, :], xp[:, 2:L + 2, :]], axis=-1)
    x_rows = x_win.reshape(B * L, 3 * Cin)

    # bf16 weights (f32 MXU accumulation), f32 biases; pack layers 2..4.
    w1 = params[0][0].astype(jnp.bfloat16).reshape(3 * Cin, F)
    b1 = params[0][1]
    w234 = jnp.stack([params[i][0] for i in (1, 2, 3)]).astype(jnp.bfloat16)
    b234 = jnp.concatenate([params[i][1] for i in (1, 2, 3)], axis=0)
    w5 = jnp.pad(params[4][0].astype(jnp.bfloat16),
                 ((0, 0), (0, 0), (0, cpad - Cout)))
    b5 = jnp.pad(params[4][1], ((0, 0), (0, cpad - Cout)))

    b_tile = _pick_b_tile(B, L)
    m_tile = b_tile * L
    grid = (B // b_tile,)

    flops = 2 * B * L * (3 * Cin * F + 3 * 3 * F * F + 3 * F * cpad)
    bytes_accessed = (x_rows.size * 4 + w1.size * 2 + b1.size * 4
                      + w234.size * 2 + b234.size * 4 + w5.size * 2
                      + b5.size * 4 + B * L * cpad * 2)
    cost = pl.CostEstimate(flops=flops,
                           transcendentals=B * L * cpad,
                           bytes_accessed=bytes_accessed)

    kernel = functools.partial(_fused_head_kernel, seg_len=L)
    out_rows = pl.pallas_call(
        kernel,
        out_shape=jax.ShapeDtypeStruct((B * L, cpad), jnp.bfloat16),
        grid_spec=pltpu.PrefetchScalarGridSpec(
            num_scalar_prefetch=0,
            grid=grid,
            in_specs=[
                pl.BlockSpec((m_tile, 3 * Cin), lambda i: (i, 0)),
                pl.BlockSpec((3 * Cin, F), lambda i: (0, 0)),
                pl.BlockSpec((1, F), lambda i: (0, 0)),
                pl.BlockSpec((3, 3, F, F), lambda i: (0, 0, 0, 0)),
                pl.BlockSpec((3, F), lambda i: (0, 0)),
                pl.BlockSpec((3, F, cpad), lambda i: (0, 0, 0)),
                pl.BlockSpec((1, cpad), lambda i: (0, 0)),
            ],
            out_specs=pl.BlockSpec((m_tile, cpad), lambda i: (i, 0)),
        ),
        compiler_params=pltpu.CompilerParams(
            dimension_semantics=("parallel",),
        ),
        cost_estimate=cost,
    )(x_rows, w1, b1, w234, b234, w5, b5)

    out = out_rows[:, :Cout].astype(jnp.float32)   # drop lane padding, upcast
    # (B, L, A*C) -> view(B, L, A, C) -> view(B, L*A, C)  ==  plain reshape.
    return out.reshape(B, L * num_anchors, num_classes)


def _reference_forward(x_ncl, params, num_anchors, num_classes):
    """Pure-JAX f32 reference using the same bf16-rounded weights."""
    out = jnp.transpose(x_ncl, (0, 2, 1)).astype(jnp.float32)
    acts = ["relu", "relu", "relu", "relu", "sigmoid"]
    for (w, b), act in zip(params, acts):
        w = w.astype(jnp.bfloat16).astype(jnp.float32)
        L = out.shape[1]
        xp = jnp.pad(out, ((0, 0), (1, 1), (0, 0)))
        acc = b[None, :, :]
        for k in range(3):
            acc = acc + jnp.einsum("blc,cf->blf", xp[:, k:k + L, :], w[k],
                                   precision=jax.lax.Precision.HIGHEST)
        out = jnp.maximum(acc, 0.0) if act == "relu" else jax.nn.sigmoid(acc)
    B = x_ncl.shape[0]
    return out.reshape(B, -1, num_classes)


if __name__ == "__main__":
    B, C_in, L = 2, 4, 16
    feature_size = 256
    num_anchors, num_classes = 1, 2

    key = jax.random.PRNGKey(0)
    key, kx = jax.random.split(key)
    x = jax.random.normal(kx, (B, C_in, L), jnp.float32)   # NCL, like PyTorch

    params = init_params(key, C_in, feature_size, num_anchors, num_classes)

    fwd = jax.jit(functools.partial(classification_model,
                                    num_anchors=num_anchors,
                                    num_classes=num_classes))
    out = jax.block_until_ready(fwd(x, params))

    assert out.shape == (B, L * num_anchors, num_classes), out.shape
    assert bool(jnp.all((out >= 0.0) & (out <= 1.0)))       # sigmoid range

    ref = _reference_forward(x, params, num_anchors, num_classes)
    max_err = float(jnp.max(jnp.abs(out - ref)))
    assert max_err < 5e-2, f"max |err| vs reference = {max_err}"

    print("KERNEL_OK")
</pallas_src>

<mosaic_0001>
module attributes {stable_mosaic.version = 11 : i64} {
  func.func @_fused_head_kernel(%arg0: i32, %arg1: memref<16x12xf32, #tpu.memory_space<vmem>>, %arg2: memref<12x256xbf16, #tpu.memory_space<vmem>>, %arg3: memref<1x256xf32, #tpu.memory_space<vmem>>, %arg4: memref<3x3x256x256xbf16, #tpu.memory_space<vmem>>, %arg5: memref<3x256xf32, #tpu.memory_space<vmem>>, %arg6: memref<3x256x128xbf16, #tpu.memory_space<vmem>>, %arg7: memref<1x128xf32, #tpu.memory_space<vmem>>, %arg8: memref<16x128xbf16, #tpu.memory_space<vmem>>) attributes {dimension_semantics = [#tpu.dimension_semantics<parallel>], iteration_bounds = array<i64: 2>, scalar_prefetch = 0 : i64, scratch_operands = 0 : i64, tpu.core_type = #tpu.core_type<tc>, window_params = [{transform_indices = @transform_0, window_bounds = array<i64: 16, 12>}, {pipeline_mode = #tpu.pipeline_mode<synchronous>, transform_indices = @transform_1, window_bounds = array<i64: 12, 256>}, {pipeline_mode = #tpu.pipeline_mode<synchronous>, transform_indices = @transform_2, window_bounds = array<i64: 1, 256>}, {pipeline_mode = #tpu.pipeline_mode<synchronous>, transform_indices = @transform_3, window_bounds = array<i64: 3, 3, 256, 256>}, {pipeline_mode = #tpu.pipeline_mode<synchronous>, transform_indices = @transform_4, window_bounds = array<i64: 3, 256>}, {pipeline_mode = #tpu.pipeline_mode<synchronous>, transform_indices = @transform_5, window_bounds = array<i64: 3, 256, 128>}, {pipeline_mode = #tpu.pipeline_mode<synchronous>, transform_indices = @transform_6, window_bounds = array<i64: 1, 128>}, {transform_indices = @transform_7, window_bounds = array<i64: 16, 128>}]} {
    %0 = tpu.iota {dimensions = array<i32: 0>} : vector<16x1xi32>
    %c16_i32 = arith.constant 16 : i32
    %c0_i32 = arith.constant 0 : i32
    %1 = arith.cmpi eq, %c16_i32, %c0_i32 : i32
    %c1_i32 = arith.constant 1 : i32
    %2 = arith.select %1, %c1_i32, %c16_i32 : i32
    %3 = vector.broadcast %2 : i32 to vector<16x1xi32>
    %4 = arith.remsi %0, %3 : vector<16x1xi32>
    %c0_i32_0 = arith.constant 0 : i32
    %5 = vector.broadcast %c0_i32_0 : i32 to vector<16x1xi32>
    %6 = arith.cmpi ne, %4, %5 : vector<16x1xi32>
    %c0_i32_1 = arith.constant 0 : i32
    %7 = vector.broadcast %c0_i32_1 : i32 to vector<16x1xi32>
    %8 = arith.cmpi slt, %4, %7 : vector<16x1xi32>
    %c0_i32_2 = arith.constant 0 : i32
    %9 = arith.cmpi slt, %2, %c0_i32_2 : i32
    %10 = vector.broadcast %9 : i1 to vector<16x1xi1>
    %11 = vector.broadcast %10 : vector<16x1xi1> to vector<16x1xi1>
    %12 = arith.xori %8, %11 : vector<16x1xi1>
    %13 = arith.andi %12, %6 : vector<16x1xi1>
    %14 = vector.broadcast %2 : i32 to vector<16x1xi32>
    %15 = arith.addi %4, %14 : vector<16x1xi32>
    %16 = arith.select %13, %15, %4 : vector<16x1xi1>, vector<16x1xi32>
    %c0_i32_3 = arith.constant 0 : i32
    %17 = vector.broadcast %c0_i32_3 : i32 to vector<16x1xi32>
    %18 = arith.cmpi ne, %16, %17 : vector<16x1xi32>
    %c15_i32 = arith.constant 15 : i32
    %19 = vector.broadcast %c15_i32 : i32 to vector<16x1xi32>
    %20 = arith.cmpi ne, %16, %19 : vector<16x1xi32>
    %c0 = arith.constant 0 : index
    %c0_4 = arith.constant 0 : index
    %21 = vector.load %arg1[%c0, %c0_4] : memref<16x12xf32, #tpu.memory_space<vmem>>, vector<16x12xf32>
    %22 = arith.truncf %21 : vector<16x12xf32> to vector<16x12xbf16>
    %c0_5 = arith.constant 0 : index
    %c0_6 = arith.constant 0 : index
    %23 = vector.load %arg2[%c0_5, %c0_6] : memref<12x256xbf16, #tpu.memory_space<vmem>>, vector<12x256xbf16>
    %cst = arith.constant dense<0.000000e+00> : vector<16x256xf32>
    %24 = tpu.matmul %22, %23, %cst {dimension_numbers = #tpu.dot_dimension_numbers<[1], [0], [0], [1], [0, 0, 1, 1], [], []>} : vector<16x12xbf16>, vector<12x256xbf16>, vector<16x256xf32> -> vector<16x256xf32>
    %c0_7 = arith.constant 0 : index
    %c0_8 = arith.constant 0 : index
    %25 = vector.load %arg3[%c0_7, %c0_8] : memref<1x256xf32, #tpu.memory_space<vmem>>, vector<1x256xf32>
    %26 = vector.broadcast %25 : vector<1x256xf32> to vector<16x256xf32>
    %27 = arith.addf %24, %26 : vector<16x256xf32>
    %cst_9 = arith.constant 0.000000e+00 : f32
    %28 = vector.broadcast %cst_9 : f32 to vector<16x256xf32>
    %29 = arith.maximumf %27, %28 : vector<16x256xf32>
    %30 = arith.truncf %29 : vector<16x256xf32> to vector<16x256xbf16>
    %c0_10 = arith.constant 0 : index
    %c0_11 = arith.constant 0 : index
    %c0_12 = arith.constant 0 : index
    %c0_13 = arith.constant 0 : index
    %31 = vector.load %arg4[%c0_10, %c0_11, %c0_12, %c0_13] : memref<3x3x256x256xbf16, #tpu.memory_space<vmem>>, vector<1x1x256x256xbf16>
    %32 = vector.shape_cast %31 : vector<1x1x256x256xbf16> to vector<256x256xbf16>
    %cst_14 = arith.constant dense<0.000000e+00> : vector<16x256xf32>
    %33 = tpu.matmul %30, %32, %cst_14 {dimension_numbers = #tpu.dot_dimension_numbers<[1], [0], [0], [1], [0, 0, 1, 1], [], []>} : vector<16x256xbf16>, vector<256x256xbf16>, vector<16x256xf32> -> vector<16x256xf32>
    %c0_15 = arith.constant 0 : index
    %c1 = arith.constant 1 : index
    %c0_16 = arith.constant 0 : index
    %c0_17 = arith.constant 0 : index
    %34 = vector.load %arg4[%c0_15, %c1, %c0_16, %c0_17] : memref<3x3x256x256xbf16, #tpu.memory_space<vmem>>, vector<1x1x256x256xbf16>
    %35 = vector.shape_cast %34 : vector<1x1x256x256xbf16> to vector<256x256xbf16>
    %cst_18 = arith.constant dense<0.000000e+00> : vector<16x256xf32>
    %36 = tpu.matmul %30, %35, %cst_18 {dimension_numbers = #tpu.dot_dimension_numbers<[1], [0], [0], [1], [0, 0, 1, 1], [], []>} : vector<16x256xbf16>, vector<256x256xbf16>, vector<16x256xf32> -> vector<16x256xf32>
    %c0_19 = arith.constant 0 : index
    %c2 = arith.constant 2 : index
    %c0_20 = arith.constant 0 : index
    %c0_21 = arith.constant 0 : index
    %37 = vector.load %arg4[%c0_19, %c2, %c0_20, %c0_21] : memref<3x3x256x256xbf16, #tpu.memory_space<vmem>>, vector<1x1x256x256xbf16>
    %38 = vector.shape_cast %37 : vector<1x1x256x256xbf16> to vector<256x256xbf16>
    %cst_22 = arith.constant dense<0.000000e+00> : vector<16x256xf32>
    %39 = tpu.matmul %30, %38, %cst_22 {dimension_numbers = #tpu.dot_dimension_numbers<[1], [0], [0], [1], [0, 0, 1, 1], [], []>} : vector<16x256xbf16>, vector<256x256xbf16>, vector<16x256xf32> -> vector<16x256xf32>
    %c0_23 = arith.constant 0 : index
    %c0_24 = arith.constant 0 : index
    %40 = vector.load %arg5[%c0_23, %c0_24] : memref<3x256xf32, #tpu.memory_space<vmem>>, vector<1x256xf32>
    %c1_i32_25 = arith.constant 1 : i32
    %41 = tpu.dynamic_rotate %33 by %c1_i32_25 dim 0 : vector<16x256xf32>, i32 -> vector<16x256xf32>
    %cst_26 = arith.constant 0.000000e+00 : f32
    %42 = vector.shape_cast %18 : vector<16x1xi1> to vector<16x1xi1>
    %43 = vector.broadcast %42 : vector<16x1xi1> to vector<16x256xi1>
    %44 = vector.broadcast %cst_26 : f32 to vector<16x256xf32>
    %45 = arith.select %43, %41, %44 : vector<16x256xi1>, vector<16x256xf32>
    %46 = arith.addf %36, %45 : vector<16x256xf32>
    %c15_i32_27 = arith.constant 15 : i32
    %47 = tpu.dynamic_rotate %39 by %c15_i32_27 dim 0 : vector<16x256xf32>, i32 -> vector<16x256xf32>
    %cst_28 = arith.constant 0.000000e+00 : f32
    %48 = vector.shape_cast %20 : vector<16x1xi1> to vector<16x1xi1>
    %49 = vector.broadcast %48 : vector<16x1xi1> to vector<16x256xi1>
    %50 = vector.broadcast %cst_28 : f32 to vector<16x256xf32>
    %51 = arith.select %49, %47, %50 : vector<16x256xi1>, vector<16x256xf32>
    %52 = arith.addf %46, %51 : vector<16x256xf32>
    %53 = vector.broadcast %40 : vector<1x256xf32> to vector<16x256xf32>
    %54 = arith.addf %52, %53 : vector<16x256xf32>
    %cst_29 = arith.constant 0.000000e+00 : f32
    %55 = vector.broadcast %cst_29 : f32 to vector<16x256xf32>
    %56 = arith.maximumf %54, %55 : vector<16x256xf32>
    %57 = arith.truncf %56 : vector<16x256xf32> to vector<16x256xbf16>
    %c1_30 = arith.constant 1 : index
    %c0_31 = arith.constant 0 : index
    %c0_32 = arith.constant 0 : index
    %c0_33 = arith.constant 0 : index
    %58 = vector.load %arg4[%c1_30, %c0_31, %c0_32, %c0_33] : memref<3x3x256x256xbf16, #tpu.memory_space<vmem>>, vector<1x1x256x256xbf16>
    %59 = vector.shape_cast %58 : vector<1x1x256x256xbf16> to vector<256x256xbf16>
    %cst_34 = arith.constant dense<0.000000e+00> : vector<16x256xf32>
    %60 = tpu.matmul %57, %59, %cst_34 {dimension_numbers = #tpu.dot_dimension_numbers<[1], [0], [0], [1], [0, 0, 1, 1], [], []>} : vector<16x256xbf16>, vector<256x256xbf16>, vector<16x256xf32> -> vector<16x256xf32>
    %c1_35 = arith.constant 1 : index
    %c1_36 = arith.constant 1 : index
    %c0_37 = arith.constant 0 : index
    %c0_38 = arith.constant 0 : index
    %61 = vector.load %arg4[%c1_35, %c1_36, %c0_37, %c0_38] : memref<3x3x256x256xbf16, #tpu.memory_space<vmem>>, vector<1x1x256x256xbf16>
    %62 = vector.shape_cast %61 : vector<1x1x256x256xbf16> to vector<256x256xbf16>
    %cst_39 = arith.constant dense<0.000000e+00> : vector<16x256xf32>
    %63 = tpu.matmul %57, %62, %cst_39 {dimension_numbers = #tpu.dot_dimension_numbers<[1], [0], [0], [1], [0, 0, 1, 1], [], []>} : vector<16x256xbf16>, vector<256x256xbf16>, vector<16x256xf32> -> vector<16x256xf32>
    %c1_40 = arith.constant 1 : index
    %c2_41 = arith.constant 2 : index
    %c0_42 = arith.constant 0 : index
    %c0_43 = arith.constant 0 : index
    %64 = vector.load %arg4[%c1_40, %c2_41, %c0_42, %c0_43] : memref<3x3x256x256xbf16, #tpu.memory_space<vmem>>, vector<1x1x256x256xbf16>
    %65 = vector.shape_cast %64 : vector<1x1x256x256xbf16> to vector<256x256xbf16>
    %cst_44 = arith.constant dense<0.000000e+00> : vector<16x256xf32>
    %66 = tpu.matmul %57, %65, %cst_44 {dimension_numbers = #tpu.dot_dimension_numbers<[1], [0], [0], [1], [0, 0, 1, 1], [], []>} : vector<16x256xbf16>, vector<256x256xbf16>, vector<16x256xf32> -> vector<16x256xf32>
    %c1_45 = arith.constant 1 : index
    %c0_46 = arith.constant 0 : index
    %67 = vector.load %arg5[%c1_45, %c0_46] : memref<3x256xf32, #tpu.memory_space<vmem>>, vector<1x256xf32>
    %c1_i32_47 = arith.constant 1 : i32
    %68 = tpu.dynamic_rotate %60 by %c1_i32_47 dim 0 : vector<16x256xf32>, i32 -> vector<16x256xf32>
    %cst_48 = arith.constant 0.000000e+00 : f32
    %69 = vector.shape_cast %18 : vector<16x1xi1> to vector<16x1xi1>
    %70 = vector.broadcast %69 : vector<16x1xi1> to vector<16x256xi1>
    %71 = vector.broadcast %cst_48 : f32 to vector<16x256xf32>
    %72 = arith.select %70, %68, %71 : vector<16x256xi1>, vector<16x256xf32>
    %73 = arith.addf %63, %72 : vector<16x256xf32>
    %c15_i32_49 = arith.constant 15 : i32
    %74 = tpu.dynamic_rotate %66 by %c15_i32_49 dim 0 : vector<16x256xf32>, i32 -> vector<16x256xf32>
    %cst_50 = arith.constant 0.000000e+00 : f32
    %75 = vector.shape_cast %20 : vector<16x1xi1> to vector<16x1xi1>
    %76 = vector.broadcast %75 : vector<16x1xi1> to vector<16x256xi1>
    %77 = vector.broadcast %cst_50 : f32 to vector<16x256xf32>
    %78 = arith.select %76, %74, %77 : vector<16x256xi1>, vector<16x256xf32>
    %79 = arith.addf %73, %78 : vector<16x256xf32>
    %80 = vector.broadcast %67 : vector<1x256xf32> to vector<16x256xf32>
    %81 = arith.addf %79, %80 : vector<16x256xf32>
    %cst_51 = arith.constant 0.000000e+00 : f32
    %82 = vector.broadcast %cst_51 : f32 to vector<16x256xf32>
    %83 = arith.maximumf %81, %82 : vector<16x256xf32>
    %84 = arith.truncf %83 : vector<16x256xf32> to vector<16x256xbf16>
    %c2_52 = arith.constant 2 : index
    %c0_53 = arith.constant 0 : index
    %c0_54 = arith.constant 0 : index
    %c0_55 = arith.constant 0 : index
    %85 = vector.load %arg4[%c2_52, %c0_53, %c0_54, %c0_55] : memref<3x3x256x256xbf16, #tpu.memory_space<vmem>>, vector<1x1x256x256xbf16>
    %86 = vector.shape_cast %85 : vector<1x1x256x256xbf16> to vector<256x256xbf16>
    %cst_56 = arith.constant dense<0.000000e+00> : vector<16x256xf32>
    %87 = tpu.matmul %84, %86, %cst_56 {dimension_numbers = #tpu.dot_dimension_numbers<[1], [0], [0], [1], [0, 0, 1, 1], [], []>} : vector<16x256xbf16>, vector<256x256xbf16>, vector<16x256xf32> -> vector<16x256xf32>
    %c2_57 = arith.constant 2 : index
    %c1_58 = arith.constant 1 : index
    %c0_59 = arith.constant 0 : index
    %c0_60 = arith.constant 0 : index
    %88 = vector.load %arg4[%c2_57, %c1_58, %c0_59, %c0_60] : memref<3x3x256x256xbf16, #tpu.memory_space<vmem>>, vector<1x1x256x256xbf16>
    %89 = vector.shape_cast %88 : vector<1x1x256x256xbf16> to vector<256x256xbf16>
    %cst_61 = arith.constant dense<0.000000e+00> : vector<16x256xf32>
    %90 = tpu.matmul %84, %89, %cst_61 {dimension_numbers = #tpu.dot_dimension_numbers<[1], [0], [0], [1], [0, 0, 1, 1], [], []>} : vector<16x256xbf16>, vector<256x256xbf16>, vector<16x256xf32> -> vector<16x256xf32>
    %c2_62 = arith.constant 2 : index
    %c2_63 = arith.constant 2 : index
    %c0_64 = arith.constant 0 : index
    %c0_65 = arith.constant 0 : index
    %91 = vector.load %arg4[%c2_62, %c2_63, %c0_64, %c0_65] : memref<3x3x256x256xbf16, #tpu.memory_space<vmem>>, vector<1x1x256x256xbf16>
    %92 = vector.shape_cast %91 : vector<1x1x256x256xbf16> to vector<256x256xbf16>
    %cst_66 = arith.constant dense<0.000000e+00> : vector<16x256xf32>
    %93 = tpu.matmul %84, %92, %cst_66 {dimension_numbers = #tpu.dot_dimension_numbers<[1], [0], [0], [1], [0, 0, 1, 1], [], []>} : vector<16x256xbf16>, vector<256x256xbf16>, vector<16x256xf32> -> vector<16x256xf32>
    %c2_67 = arith.constant 2 : index
    %c0_68 = arith.constant 0 : index
    %94 = vector.load %arg5[%c2_67, %c0_68] : memref<3x256xf32, #tpu.memory_space<vmem>>, vector<1x256xf32>
    %c1_i32_69 = arith.constant 1 : i32
    %95 = tpu.dynamic_rotate %87 by %c1_i32_69 dim 0 : vector<16x256xf32>, i32 -> vector<16x256xf32>
    %cst_70 = arith.constant 0.000000e+00 : f32
    %96 = vector.shape_cast %18 : vector<16x1xi1> to vector<16x1xi1>
    %97 = vector.broadcast %96 : vector<16x1xi1> to vector<16x256xi1>
    %98 = vector.broadcast %cst_70 : f32 to vector<16x256xf32>
    %99 = arith.select %97, %95, %98 : vector<16x256xi1>, vector<16x256xf32>
    %100 = arith.addf %90, %99 : vector<16x256xf32>
    %c15_i32_71 = arith.constant 15 : i32
    %101 = tpu.dynamic_rotate %93 by %c15_i32_71 dim 0 : vector<16x256xf32>, i32 -> vector<16x256xf32>
    %cst_72 = arith.constant 0.000000e+00 : f32
    %102 = vector.shape_cast %20 : vector<16x1xi1> to vector<16x1xi1>
    %103 = vector.broadcast %102 : vector<16x1xi1> to vector<16x256xi1>
    %104 = vector.broadcast %cst_72 : f32 to vector<16x256xf32>
    %105 = arith.select %103, %101, %104 : vector<16x256xi1>, vector<16x256xf32>
    %106 = arith.addf %100, %105 : vector<16x256xf32>
    %107 = vector.broadcast %94 : vector<1x256xf32> to vector<16x256xf32>
    %108 = arith.addf %106, %107 : vector<16x256xf32>
    %cst_73 = arith.constant 0.000000e+00 : f32
    %109 = vector.broadcast %cst_73 : f32 to vector<16x256xf32>
    %110 = arith.maximumf %108, %109 : vector<16x256xf32>
    %111 = arith.truncf %110 : vector<16x256xf32> to vector<16x256xbf16>
    %c0_74 = arith.constant 0 : index
    %c0_75 = arith.constant 0 : index
    %c0_76 = arith.constant 0 : index
    %112 = vector.load %arg6[%c0_74, %c0_75, %c0_76] : memref<3x256x128xbf16, #tpu.memory_space<vmem>>, vector<1x256x128xbf16>
    %113 = vector.shape_cast %112 : vector<1x256x128xbf16> to vector<256x128xbf16>
    %cst_77 = arith.constant dense<0.000000e+00> : vector<16x128xf32>
    %114 = tpu.matmul %111, %113, %cst_77 {dimension_numbers = #tpu.dot_dimension_numbers<[1], [0], [0], [1], [0, 0, 1, 1], [], []>} : vector<16x256xbf16>, vector<256x128xbf16>, vector<16x128xf32> -> vector<16x128xf32>
    %c1_78 = arith.constant 1 : index
    %c0_79 = arith.constant 0 : index
    %c0_80 = arith.constant 0 : index
    %115 = vector.load %arg6[%c1_78, %c0_79, %c0_80] : memref<3x256x128xbf16, #tpu.memory_space<vmem>>, vector<1x256x128xbf16>
    %116 = vector.shape_cast %115 : vector<1x256x128xbf16> to vector<256x128xbf16>
    %cst_81 = arith.constant dense<0.000000e+00> : vector<16x128xf32>
    %117 = tpu.matmul %111, %116, %cst_81 {dimension_numbers = #tpu.dot_dimension_numbers<[1], [0], [0], [1], [0, 0, 1, 1], [], []>} : vector<16x256xbf16>, vector<256x128xbf16>, vector<16x128xf32> -> vector<16x128xf32>
    %c2_82 = arith.constant 2 : index
    %c0_83 = arith.constant 0 : index
    %c0_84 = arith.constant 0 : index
    %118 = vector.load %arg6[%c2_82, %c0_83, %c0_84] : memref<3x256x128xbf16, #tpu.memory_space<vmem>>, vector<1x256x128xbf16>
    %119 = vector.shape_cast %118 : vector<1x256x128xbf16> to vector<256x128xbf16>
    %cst_85 = arith.constant dense<0.000000e+00> : vector<16x128xf32>
    %120 = tpu.matmul %111, %119, %cst_85 {dimension_numbers = #tpu.dot_dimension_numbers<[1], [0], [0], [1], [0, 0, 1, 1], [], []>} : vector<16x256xbf16>, vector<256x128xbf16>, vector<16x128xf32> -> vector<16x128xf32>
    %c1_i32_86 = arith.constant 1 : i32
    %121 = tpu.dynamic_rotate %114 by %c1_i32_86 dim 0 : vector<16x128xf32>, i32 -> vector<16x128xf32>
    %cst_87 = arith.constant 0.000000e+00 : f32
    %122 = vector.shape_cast %18 : vector<16x1xi1> to vector<16x1xi1>
    %123 = vector.broadcast %122 : vector<16x1xi1> to vector<16x128xi1>
    %124 = vector.broadcast %cst_87 : f32 to vector<16x128xf32>
    %125 = arith.select %123, %121, %124 : vector<16x128xi1>, vector<16x128xf32>
    %126 = arith.addf %117, %125 : vector<16x128xf32>
    %c15_i32_88 = arith.constant 15 : i32
    %127 = tpu.dynamic_rotate %120 by %c15_i32_88 dim 0 : vector<16x128xf32>, i32 -> vector<16x128xf32>
    %cst_89 = arith.constant 0.000000e+00 : f32
    %128 = vector.shape_cast %20 : vector<16x1xi1> to vector<16x1xi1>
    %129 = vector.broadcast %128 : vector<16x1xi1> to vector<16x128xi1>
    %130 = vector.broadcast %cst_89 : f32 to vector<16x128xf32>
    %131 = arith.select %129, %127, %130 : vector<16x128xi1>, vector<16x128xf32>
    %132 = arith.addf %126, %131 : vector<16x128xf32>
    %c0_90 = arith.constant 0 : index
    %c0_91 = arith.constant 0 : index
    %133 = vector.load %arg7[%c0_90, %c0_91] : memref<1x128xf32, #tpu.memory_space<vmem>>, vector<1x128xf32>
    %134 = vector.broadcast %133 : vector<1x128xf32> to vector<16x128xf32>
    %135 = arith.addf %132, %134 : vector<16x128xf32>
    %136 = arith.negf %135 : vector<16x128xf32>
    %137 = math.exp %136 : vector<16x128xf32>
    %cst_92 = arith.constant 1.000000e+00 : f32
    %138 = vector.broadcast %cst_92 : f32 to vector<16x128xf32>
    %139 = arith.addf %138, %137 : vector<16x128xf32>
    %140 = arith.divf %138, %139 : vector<16x128xf32>
    %141 = arith.truncf %140 : vector<16x128xf32> to vector<16x128xbf16>
    %c0_93 = arith.constant 0 : index
    %c0_94 = arith.constant 0 : index
    %142 = vector.load %arg8[%c0_93, %c0_94] : memref<16x128xbf16, #tpu.memory_space<vmem>>, vector<16x128xbf16>
    tpu.vector_store %arg8[%c0_93, %c0_94], %141 {strides = array<i32>} : memref<16x128xbf16, #tpu.memory_space<vmem>>, vector<16x128xbf16>,
    return
  }
  func.func @transform_0(%arg0: i32) -> (i32, i32) {
    %c0_i32 = arith.constant 0 : i32
    %c0_i32_0 = arith.constant 0 : i32
    return %arg0, %c0_i32 : i32, i32
  }
  func.func @transform_1(%arg0: i32) -> (i32, i32) {
    %c0_i32 = arith.constant 0 : i32
    %c0_i32_0 = arith.constant 0 : i32
    %c0_i32_1 = arith.constant 0 : i32
    return %c0_i32, %c0_i32_0 : i32, i32
  }
  func.func @transform_2(%arg0: i32) -> (i32, i32) {
    %c0_i32 = arith.constant 0 : i32
    %c0_i32_0 = arith.constant 0 : i32
    %c0_i32_1 = arith.constant 0 : i32
    return %c0_i32, %c0_i32_0 : i32, i32
  }
  func.func @transform_3(%arg0: i32) -> (i32, i32, i32, i32) {
    %c0_i32 = arith.constant 0 : i32
    %c0_i32_0 = arith.constant 0 : i32
    %c0_i32_1 = arith.constant 0 : i32
    %c0_i32_2 = arith.constant 0 : i32
    %c0_i32_3 = arith.constant 0 : i32
    return %c0_i32, %c0_i32_0, %c0_i32_1, %c0_i32_2 : i32, i32, i32, i32
  }
  func.func @transform_4(%arg0: i32) -> (i32, i32) {
    %c0_i32 = arith.constant 0 : i32
    %c0_i32_0 = arith.constant 0 : i32
    %c0_i32_1 = arith.constant 0 : i32
    return %c0_i32, %c0_i32_0 : i32, i32
  }
  func.func @transform_5(%arg0: i32) -> (i32, i32, i32) {
    %c0_i32 = arith.constant 0 : i32
    %c0_i32_0 = arith.constant 0 : i32
    %c0_i32_1 = arith.constant 0 : i32
    %c0_i32_2 = arith.constant 0 : i32
    return %c0_i32, %c0_i32_0, %c0_i32_1 : i32, i32, i32
  }
  func.func @transform_6(%arg0: i32) -> (i32, i32) {
    %c0_i32 = arith.constant 0 : i32
    %c0_i32_0 = arith.constant 0 : i32
    %c0_i32_1 = arith.constant 0 : i32
    return %c0_i32, %c0_i32_0 : i32, i32
  }
  func.func @transform_7(%arg0: i32) -> (i32, i32) {
    %c0_i32 = arith.constant 0 : i32
    %c0_i32_0 = arith.constant 0 : i32
    return %arg0, %c0_i32 : i32, i32
  }
}

</mosaic_0001>

<bundles_post_ra>
// kernel: classification_model.1
= control target key start
LH: loop header
LB: loop body
LE: loop exit
PB: predicated region body
PF: predicated region fallthrough
CT: control target
= control target key end

     0   :  { %s5447_s24 = smov 0   ;;  %s7568_s0 = inlined_call_operand.vmem [shape: f32[32,12], index: 0, kind: input, shape index: {}]   ;;  %s7569_s1 = inlined_call_operand.vmem [shape: bf16[12,256], index: 1, kind: input, shape index: {}]   ;;  %s7570_s2 = inlined_call_operand.vmem [shape: f32[1,256], index: 2, kind: input, shape index: {}]   ;;  %s7571_s3 = inlined_call_operand.vmem [shape: bf16[3,3,256,256], index: 3, kind: input, shape index: {}]   ;;  %s7572_s4 = inlined_call_operand.vmem [shape: f32[3,256], index: 4, kind: input, shape index: {}]   ;;  %s7573_s5 = inlined_call_operand.vmem [shape: bf16[3,256,128], index: 5, kind: input, shape index: {}]   ;;  %s7574_s6 = inlined_call_operand.vmem [shape: f32[1,128], index: 6, kind: input, shape index: {}]   ;;  %s7575_s7 = inlined_call_operand.vmem [shape: bf16[32,128], index: 7, kind: output, shape index: {}]  }
   0x1 LB: > { %s3350_s25 = sadd.s32 4294967295, %s5405_s24   ;;  %p3354_p0 = scmp.ge.s32.totalorder %s5405_s24, 1  ;;  %s5405_s24 = sphi %s5447_s24, %s17_s24  }
   0x2   : > { %p238_p1 = scmp.lt.s32.totalorder %s5405_s24, 3 }
   0x4   : > { %p239_p2 = pnand %p3354_p0, %p238_p1 }
   0x5   : > { %s3355_s30 = sshll.u32 (!%p239_p2), %s3350_s25, 1 }
   0x6   : > { %242 = sbr.rel (%p239_p2) target bundleno = 910 (0x38e), region = 48  ;;  %p271_p3 = scmp.lt.s32.totalorder (!%p239_p2), %s3355_s30, 3 }
   0xb   : > { %v3361_v0 = vld [vmem:[%s7569_s1] sm:$0xf]  ;;  %v5040_v1 = vld [vmem:[%s7569_s1 + $0x4] sm:$0x30]  ;;  %vm337_vm0 = vcmask 1045504   ;;  %s7581_s30 = smov (!%p271_p3, %s3355_s30), 3 }
   0xc   : > { %v3362_v2 = vor.u32 %v5040_v1, %v3361_v0  ;;  %v5039_v3 = vld [vmem:[%s7569_s1 + $0x4] sm:$0xf]  ;;  %v3363_v4 = vld [vmem:[%s7569_s1 + $0x8] sm:$0x30]  ;;  %v3427_v6 = vld [vmem:[%s7571_s3 + $0x70] sm:$0xf] }
   0xd   : > { %v3366_v5 = vor.u32 %v5039_v3, %v3363_v4  ;;  %v5056_v7 = vld [vmem:[%s7571_s3 + $0x74] sm:$0xf0]  ;;  %v3491_v8 = vld [vmem:[%s7571_s3 + $0xf0] sm:$0xf]  ;;  %v5055_v12 = vld [vmem:[%s7571_s3 + $0x74] sm:$0xf] }
   0xe   : > { %v339_v9 = vsel %vm337_vm0, %v3362_v2, 0  ;;  %v3428_v10 = vor.u32 %v5056_v7, %v3427_v6  ;;  %v5072_v11 = vld [vmem:[%s7571_s3 + $0xf4] sm:$0xf0]  ;;  %v3429_v15 = vld [vmem:[%s7571_s3 + $0x78] sm:$0xf0]  ;;  %s3356_s27 = sshll.u32 %s7581_s30, 3 }
   0xf   : > { %351 = vmatpush.bf16.msra.mxu0 %v339_v9  ;;  %v342_v13 = vsel %vm337_vm0, %v3366_v5, 0  ;;  %v3492_v14 = vor.u32 %v5072_v11, %v3491_v8  ;;  %v5071_v16 = vld [vmem:[%s7571_s3 + $0xf4] sm:$0xf]  ;;  %v3432_v17 = vor.u32 %v5055_v12, %v3429_v15  ;;  %v3493_v18 = vld [vmem:[%s7571_s3 + $0xf8] sm:$0xf0]  ;;  %s274_s12 = scalar_lea.vmem %s7568_s0, %s3356_s27  ;;  %vm333_vm1 = vcmask 97280  }
  0x10   : > { %365 = vmatpush.bf16.msra.mxu1 %v342_v13  ;;  %570 = vmatpush.bf16.msra.mxu2 %v3428_v10  ;;  %v3419_v19 = vld [vmem:[%s7571_s3 + $0x60] sm:$0xf]  ;;  %v3496_v20 = vor.u32 %v5071_v16, %v3493_v18  ;;  %v5054_v21 = vld [vmem:[%s7571_s3 + $0x64] sm:$0xf0]  ;;  %v5053_v28 = vld [vmem:[%s7571_s3 + $0x64] sm:$0xf] }
  0x11   : > { %584 = vmatpush.bf16.msra.mxu3 %v3492_v14  ;;  %v3483_v22 = vld [vmem:[%s7571_s3 + $0xe0] sm:$0xf]  ;;  %v5070_v23 = vld [vmem:[%s7571_s3 + $0xe4] sm:$0xf0]  ;;  %v3420_v26 = vor.u32 %v5054_v21, %v3419_v19  ;;  %v3421_v30 = vld [vmem:[%s7571_s3 + $0x68] sm:$0xf0] }
  0x12   : > { %v314_v24 = vld [vmem:[%s274_s12] sm:$0xff]  ;;  %v315_v25 = vld [vmem:[%s274_s12 + $0x8] sm:$0xff]  ;;  %v3484_v27 = vor.u32 %v5070_v23, %v3483_v22  ;;  %v3424_v33 = vor.u32 %v5053_v28, %v3421_v30  ;;  %v3411_v35 = vld [vmem:[%s7571_s3 + $0x50] sm:$0xf]  ;;  %s3358_s14 = sshll.u32 %s7581_s30, 2 }
  0x13   : > { %598 = vmatpush.bf16.msrb.mxu0 %v3432_v17  ;;  %v316_v29 = vpack.c.bf16 %v315_v25, %v314_v24  ;;  %v5069_v31 = vld [vmem:[%s7571_s3 + $0xe4] sm:$0xf]  ;;  %v3485_v32 = vld [vmem:[%s7571_s3 + $0xe8] sm:$0xf0]  ;;  %v5052_v36 = vld [vmem:[%s7571_s3 + $0x54] sm:$0xf0]  ;;  %s280_s17 = scalar_lea.vmem %s7575_s7, %s3358_s14 }
  0x14   : > { %612 = vmatpush.bf16.msrb.mxu1 %v3496_v20  ;;  %571 = vmatpush.bf16.msra.mxu2 %v3420_v26  ;;  %v3488_v34 = vor.u32 %v5069_v31, %v3485_v32  ;;  %v3475_v37 = vld [vmem:[%s7571_s3 + $0xd0] sm:$0xf]  ;;  %v3412_v38 = vor.u32 %v5052_v36, %v3411_v35  ;;  %v5068_v39 = vld [vmem:[%s7571_s3 + $0xd4] sm:$0xf0]  ;;  %v5051_v40 = vld [vmem:[%s7571_s3 + $0x54] sm:$0xf] }
  0x15   : > { %3367 = vmatmul.msk.bf16.vlgmr.msra.gmra.mxu0 %vm333_vm1, %v316_v29  ;;  %3368 = vmatmul.msk.bf16.vlgmr.msra.gmra.mxu1 %vm333_vm1, %v316_v29  ;;  %v3413_v41 = vld [vmem:[%s7571_s3 + $0x58] sm:$0xf0]  ;;  %v3476_v42 = vor.u32 %v5068_v39, %v3475_v37  ;;  %v5067_v44 = vld [vmem:[%s7571_s3 + $0xd4] sm:$0xf]  ;;  %v3403_v46 = vld [vmem:[%s7571_s3 + $0x40] sm:$0xf] }
  0x16   : > { %585 = vmatpush.bf16.msra.mxu3 %v3484_v27  ;;  %v3416_v43 = vor.u32 %v5051_v40, %v3413_v41  ;;  %v3477_v45 = vld [vmem:[%s7571_s3 + $0xd8] sm:$0xf0]  ;;  %v5050_v48 = vld [vmem:[%s7571_s3 + $0x44] sm:$0xf0]  ;;  %v3467_v49 = vld [vmem:[%s7571_s3 + $0xc0] sm:$0xf] }
  0x17   : > { %599 = vmatpush.bf16.msrb.mxu0 %v3424_v33  ;;  %v3480_v47 = vor.u32 %v5067_v44, %v3477_v45  ;;  %v5066_v50 = vld [vmem:[%s7571_s3 + $0xc4] sm:$0xf0]  ;;  %v3404_v51 = vor.u32 %v5050_v48, %v3403_v46  ;;  %v5049_v52 = vld [vmem:[%s7571_s3 + $0x44] sm:$0xf]  ;;  %v3405_v53 = vld [vmem:[%s7571_s3 + $0x48] sm:$0xf0] }
  0x18   : > { %613 = vmatpush.bf16.msrb.mxu1 %v3488_v34  ;;  %572 = vmatpush.bf16.msra.mxu2 %v3412_v38  ;;  %v5065_v54 = vld [vmem:[%s7571_s3 + $0xc4] sm:$0xf]  ;;  %v3469_v55 = vld [vmem:[%s7571_s3 + $0xc8] sm:$0xf0]  ;;  %v3395_v56 = vld [vmem:[%s7571_s3 + $0x30] sm:$0xf]  ;;  %v3468_v58 = vor.u32 %v5066_v50, %v3467_v49  ;;  %v3408_v59 = vor.u32 %v5049_v52, %v3405_v53 }
  0x19   : > { %v5048_v57 = vld [vmem:[%s7571_s3 + $0x34] sm:$0xf0]  ;;  %v3459_v60 = vld [vmem:[%s7571_s3 + $0xb0] sm:$0xf]  ;;  %v3472_v61 = vor.u32 %v5065_v54, %v3469_v55  ;;  %v5047_v63 = vld [vmem:[%s7571_s3 + $0x34] sm:$0xf] }
  0x1a   : > { %586 = vmatpush.bf16.msra.mxu3 %v3476_v42  ;;  %v5064_v62 = vld [vmem:[%s7571_s3 + $0xb4] sm:$0xf0]  ;;  %v3397_v0 = vld [vmem:[%s7571_s3 + $0x38] sm:$0xf0]  ;;  %v3396_v1 = vor.u32 %v5048_v57, %v3395_v56  ;;  %v5063_v2 = vld [vmem:[%s7571_s3 + $0xb4] sm:$0xf] }
  0x1b   : > { %600 = vmatpush.bf16.msrb.mxu0 %v3416_v43  ;;  %v3461_v3 = vld [vmem:[%s7571_s3 + $0xb8] sm:$0xf0]  ;;  %v3387_v4 = vld [vmem:[%s7571_s3 + $0x20] sm:$0xf]  ;;  %v5046_v5 = vld [vmem:[%s7571_s3 + $0x24] sm:$0xf0]  ;;  %v3460_v6 = vor.u32 %v5064_v62, %v3459_v60  ;;  %v3400_v7 = vor.u32 %v5047_v63, %v3397_v0 }
  0x1c   : > { %614 = vmatpush.bf16.msrb.mxu1 %v3480_v47  ;;  %573 = vmatpush.bf16.msra.mxu2 %v3404_v51  ;;  %v3451_v8 = vld [vmem:[%s7571_s3 + $0xa0] sm:$0xf]  ;;  %v3464_v9 = vor.u32 %v5063_v2, %v3461_v3  ;;  %v5062_v10 = vld [vmem:[%s7571_s3 + $0xa4] sm:$0xf0]  ;;  %v5045_v11 = vld [vmem:[%s7571_s3 + $0x24] sm:$0xf]  ;;  %v3388_v13 = vor.u32 %v5046_v5, %v3387_v4 }
  0x1d   : > { %v3389_v12 = vld [vmem:[%s7571_s3 + $0x28] sm:$0xf0]  ;;  %v5061_v14 = vld [vmem:[%s7571_s3 + $0xa4] sm:$0xf]  ;;  %v3379_v16 = vld [vmem:[%s7571_s3 + $0x10] sm:$0xf]  ;;  %v3452_v18 = vor.u32 %v5062_v10, %v3451_v8 }
  0x1e   : > { %587 = vmatpush.bf16.msra.mxu3 %v3468_v58  ;;  %v3453_v15 = vld [vmem:[%s7571_s3 + $0xa8] sm:$0xf0]  ;;  %v5044_v17 = vld [vmem:[%s7571_s3 + $0x14] sm:$0xf0]  ;;  %v3392_v19 = vor.u32 %v5045_v11, %v3389_v12  ;;  %v3443_v20 = vld [vmem:[%s7571_s3 + $0x90] sm:$0xf] }
  0x1f   : > { %601 = vmatpush.bf16.msrb.mxu0 %v3408_v59  ;;  %v3456_v21 = vor.u32 %v5061_v14, %v3453_v15  ;;  %v5060_v22 = vld [vmem:[%s7571_s3 + $0x94] sm:$0xf0]  ;;  %v5043_v23 = vld [vmem:[%s7571_s3 + $0x14] sm:$0xf]  ;;  %v3381_v24 = vld [vmem:[%s7571_s3 + $0x18] sm:$0xf0]  ;;  %v3380_v25 = vor.u32 %v5044_v17, %v3379_v16 }
  0x20   : > { %615 = vmatpush.bf16.msrb.mxu1 %v3472_v61  ;;  %574 = vmatpush.bf16.msra.mxu2 %v3396_v1  ;;  %v5059_v26 = vld [vmem:[%s7571_s3 + $0x94] sm:$0xf]  ;;  %v3445_v27 = vld [vmem:[%s7571_s3 + $0x98] sm:$0xf0]  ;;  %v3371_v28 = vld [vmem:[%s7571_s3] sm:$0xf]  ;;  %v3444_v32 = vor.u32 %v5060_v22, %v3443_v20  ;;  %v3384_v33 = vor.u32 %v5043_v23, %v3381_v24 }
  0x21   : > { %v5042_v29 = vld [vmem:[%s7571_s3 + $0x4] sm:$0xf0]  ;;  %v3435_v30 = vld [vmem:[%s7571_s3 + $0x80] sm:$0xf]  ;;  %v5041_v34 = vld [vmem:[%s7571_s3 + $0x4] sm:$0xf]  ;;  %v3448_v37 = vor.u32 %v5059_v26, %v3445_v27 }
  0x22   : > { %588 = vmatpush.bf16.msra.mxu3 %v3460_v6  ;;  %v5058_v31 = vld [vmem:[%s7571_s3 + $0x84] sm:$0xf0]  ;;  %v3619_v35 = vld [vmem:[%s7571_s3 + $0x270] sm:$0xf]  ;;  %v5120_v36 = vld [vmem:[%s7571_s3 + $0x274] sm:$0xf0]  ;;  %v3372_v41 = vor.u32 %v5042_v29, %v3371_v28 }
  0x23   : > { %602 = vmatpush.bf16.msrb.mxu0 %v3400_v7  ;;  %v3373_v38 = vld [vmem:[%s7571_s3 + $0x8] sm:$0xf0]  ;;  %v5057_v39 = vld [vmem:[%s7571_s3 + $0x84] sm:$0xf]  ;;  %v3683_v42 = vld [vmem:[%s7571_s3 + $0x2f0] sm:$0xf]  ;;  %v3620_v45 = vor.u32 %v5120_v36, %v3619_v35  ;;  %v3436_v49 = vor.u32 %v5058_v31, %v3435_v30 }
  0x24   : > { %616 = vmatpush.bf16.msrb.mxu1 %v3464_v9  ;;  %575 = vmatpush.bf16.msra.mxu2 %v3388_v13  ;;  %v3437_v40 = vld [vmem:[%s7571_s3 + $0x88] sm:$0xf0]  ;;  %v5136_v43 = vld [vmem:[%s7571_s3 + $0x2f4] sm:$0xf0]  ;;  %v5119_v44 = vld [vmem:[%s7571_s3 + $0x274] sm:$0xf]  ;;  %v3376_v50 = vor.u32 %v5041_v34, %v3373_v38 }
  0x25   : > { %v3621_v46 = vld [vmem:[%s7571_s3 + $0x278] sm:$0xf0]  ;;  %v5135_v47 = vld [vmem:[%s7571_s3 + $0x2f4] sm:$0xf]  ;;  %v3611_v51 = vld [vmem:[%s7571_s3 + $0x260] sm:$0xf]  ;;  %v3440_v53 = vor.u32 %v5057_v39, %v3437_v40  ;;  %v3684_v54 = vor.u32 %v5136_v43, %v3683_v42 }
  0x26   : > { %589 = vmatpush.bf16.msra.mxu3 %v3452_v18  ;;  %v3685_v48 = vld [vmem:[%s7571_s3 + $0x2f8] sm:$0xf0]  ;;  %v5118_v52 = vld [vmem:[%s7571_s3 + $0x264] sm:$0xf0]  ;;  %v3624_v55 = vor.u32 %v5119_v44, %v3621_v46  ;;  %v3675_v57 = vld [vmem:[%s7571_s3 + $0x2e0] sm:$0xf] }
  0x27   : > { %603 = vmatpush.bf16.msrb.mxu0 %v3392_v19  ;;  %v3688_v56 = vor.u32 %v5135_v47, %v3685_v48  ;;  %v5134_v58 = vld [vmem:[%s7571_s3 + $0x2e4] sm:$0xf0]  ;;  %v5117_v59 = vld [vmem:[%s7571_s3 + $0x264] sm:$0xf]  ;;  %v3612_v60 = vor.u32 %v5118_v52, %v3611_v51  ;;  %v3613_v61 = vld [vmem:[%s7571_s3 + $0x268] sm:$0xf0] }
  0x28   : > { %617 = vmatpush.bf16.msrb.mxu1 %v3456_v21  ;;  %576 = vmatpush.bf16.msra.mxu2 %v3380_v25  ;;  %v5133_v62 = vld [vmem:[%s7571_s3 + $0x2e4] sm:$0xf]  ;;  %v3677_v63 = vld [vmem:[%s7571_s3 + $0x2e8] sm:$0xf0]  ;;  %v3603_v0 = vld [vmem:[%s7571_s3 + $0x250] sm:$0xf]  ;;  %v3676_v2 = vor.u32 %v5134_v58, %v3675_v57  ;;  %v3616_v3 = vor.u32 %v5117_v59, %v3613_v61 }
  0x29   : > { %v5116_v1 = vld [vmem:[%s7571_s3 + $0x254] sm:$0xf0]  ;;  %v3680_v4 = vor.u32 %v5133_v62, %v3677_v63  ;;  %v3667_v5 = vld [vmem:[%s7571_s3 + $0x2d0] sm:$0xf]  ;;  %v5115_v7 = vld [vmem:[%s7571_s3 + $0x254] sm:$0xf] }
  0x2a   : > { %590 = vmatpush.bf16.msra.mxu3 %v3444_v32  ;;  %v5132_v6 = vld [vmem:[%s7571_s3 + $0x2d4] sm:$0xf0]  ;;  %v3604_v8 = vor.u32 %v5116_v1, %v3603_v0  ;;  %v3605_v9 = vld [vmem:[%s7571_s3 + $0x258] sm:$0xf0]  ;;  %v5131_v10 = vld [vmem:[%s7571_s3 + $0x2d4] sm:$0xf] }
  0x2b   : > { %604 = vmatpush.bf16.msrb.mxu0 %v3384_v33  ;;  %v3669_v11 = vld [vmem:[%s7571_s3 + $0x2d8] sm:$0xf0]  ;;  %v3595_v12 = vld [vmem:[%s7571_s3 + $0x240] sm:$0xf]  ;;  %v5114_v13 = vld [vmem:[%s7571_s3 + $0x244] sm:$0xf0]  ;;  %v3668_v14 = vor.u32 %v5132_v6, %v3667_v5  ;;  %v3608_v15 = vor.u32 %v5115_v7, %v3605_v9 }
  0x2c   : > { %618 = vmatpush.bf16.msrb.mxu1 %v3448_v37  ;;  %577 = vmatpush.bf16.msra.mxu2 %v3372_v41  ;;  %v3672_v16 = vor.u32 %v5131_v10, %v3669_v11  ;;  %v3659_v17 = vld [vmem:[%s7571_s3 + $0x2c0] sm:$0xf]  ;;  %v5130_v18 = vld [vmem:[%s7571_s3 + $0x2c4] sm:$0xf0]  ;;  %v5113_v19 = vld [vmem:[%s7571_s3 + $0x244] sm:$0xf]  ;;  %v3596_v20 = vor.u32 %v5114_v13, %v3595_v12 }
  0x2d   : > { %v3597_v21 = vld [vmem:[%s7571_s3 + $0x248] sm:$0xf0]  ;;  %v5129_v22 = vld [vmem:[%s7571_s3 + $0x2c4] sm:$0xf]  ;;  %v3660_v24 = vor.u32 %v5130_v18, %v3659_v17  ;;  %v3587_v27 = vld [vmem:[%s7571_s3 + $0x230] sm:$0xf] }
  0x2e   : > { %591 = vmatpush.bf16.msra.mxu3 %v3436_v49  ;;  %v3661_v23 = vld [vmem:[%s7571_s3 + $0x2c8] sm:$0xf0]  ;;  %v3600_v25 = vor.u32 %v5113_v19, %v3597_v21  ;;  %v5112_v28 = vld [vmem:[%s7571_s3 + $0x234] sm:$0xf0]  ;;  %v3651_v29 = vld [vmem:[%s7571_s3 + $0x2b0] sm:$0xf] }
  0x2f   : > { %605 = vmatpush.bf16.msrb.mxu0 %v3376_v50  ;;  %v3664_v26 = vor.u32 %v5129_v22, %v3661_v23  ;;  %v3588_v30 = vor.u32 %v5112_v28, %v3587_v27  ;;  %v5128_v31 = vld [vmem:[%s7571_s3 + $0x2b4] sm:$0xf0]  ;;  %v5111_v32 = vld [vmem:[%s7571_s3 + $0x234] sm:$0xf]  ;;  %v3589_v34 = vld [vmem:[%s7571_s3 + $0x238] sm:$0xf0] }
  0x30   : > { %852 = vmatpush.bf16.msrb.mxu2 %v3620_v45  ;;  %619 = vmatpush.bf16.msrb.mxu1 %v3440_v53  ;;  %v3652_v33 = vor.u32 %v5128_v31, %v3651_v29  ;;  %v5127_v35 = vld [vmem:[%s7571_s3 + $0x2b4] sm:$0xf]  ;;  %v3653_v36 = vld [vmem:[%s7571_s3 + $0x2b8] sm:$0xf0]  ;;  %v3592_v37 = vor.u32 %v5111_v32, %v3589_v34  ;;  %v3579_v39 = vld [vmem:[%s7571_s3 + $0x220] sm:$0xf] }
  0x31   : > { %v3656_v38 = vor.u32 %v5127_v35, %v3653_v36  ;;  %v5110_v40 = vld [vmem:[%s7571_s3 + $0x224] sm:$0xf0]  ;;  %v3643_v41 = vld [vmem:[%s7571_s3 + $0x2a0] sm:$0xf]  ;;  %v5109_v44 = vld [vmem:[%s7571_s3 + $0x224] sm:$0xf] }
  0x32   : > { %866 = vmatpush.bf16.msrb.mxu3 %v3684_v54  ;;  %v3580_v42 = vor.u32 %v5110_v40, %v3579_v39  ;;  %v5126_v43 = vld [vmem:[%s7571_s3 + $0x2a4] sm:$0xf0]  ;;  %v3581_v45 = vld [vmem:[%s7571_s3 + $0x228] sm:$0xf0]  ;;  %v5125_v48 = vld [vmem:[%s7571_s3 + $0x2a4] sm:$0xf] }
  0x33   : > { %880 = vmatpush.bf16.msra.mxu0 %v3624_v55  ;;  %v3644_v46 = vor.u32 %v5126_v43, %v3643_v41  ;;  %v3584_v47 = vor.u32 %v5109_v44, %v3581_v45  ;;  %v3645_v49 = vld [vmem:[%s7571_s3 + $0x2a8] sm:$0xf0]  ;;  %v3571_v51 = vld [vmem:[%s7571_s3 + $0x210] sm:$0xf]  ;;  %v5108_v52 = vld [vmem:[%s7571_s3 + $0x214] sm:$0xf0] }
  0x34   : > { %894 = vmatpush.bf16.msra.mxu1 %v3688_v56  ;;  %853 = vmatpush.bf16.msrb.mxu2 %v3612_v60  ;;  %v3648_v50 = vor.u32 %v5125_v48, %v3645_v49  ;;  %v3635_v53 = vld [vmem:[%s7571_s3 + $0x290] sm:$0xf]  ;;  %v3572_v54 = vor.u32 %v5108_v52, %v3571_v51  ;;  %v5124_v55 = vld [vmem:[%s7571_s3 + $0x294] sm:$0xf0]  ;;  %v5107_v56 = vld [vmem:[%s7571_s3 + $0x214] sm:$0xf] }
  0x35   : > { %v3573_v57 = vld [vmem:[%s7571_s3 + $0x218] sm:$0xf0]  ;;  %v3636_v58 = vor.u32 %v5124_v55, %v3635_v53  ;;  %v5123_v60 = vld [vmem:[%s7571_s3 + $0x294] sm:$0xf]  ;;  %v3563_v63 = vld [vmem:[%s7571_s3 + $0x200] sm:$0xf] }
  0x36   : > { %867 = vmatpush.bf16.msrb.mxu3 %v3676_v2  ;;  %v3576_v59 = vor.u32 %v5107_v56, %v3573_v57  ;;  %v3637_v61 = vld [vmem:[%s7571_s3 + $0x298] sm:$0xf0]  ;;  %v5106_v0 = vld [vmem:[%s7571_s3 + $0x204] sm:$0xf0]  ;;  %v3627_v1 = vld [vmem:[%s7571_s3 + $0x280] sm:$0xf] }
  0x37   : > { %881 = vmatpush.bf16.msra.mxu0 %v3616_v3  ;;  %v3640_v62 = vor.u32 %v5123_v60, %v3637_v61  ;;  %v3564_v2 = vor.u32 %v5106_v0, %v3563_v63  ;;  %v5122_v3 = vld [vmem:[%s7571_s3 + $0x284] sm:$0xf0]  ;;  %v3565_v5 = vld [vmem:[%s7571_s3 + $0x208] sm:$0xf0]  ;;  %v319_v11 = vld [vmem:[%s7570_s2] sm:$0x3] }
  0x38   : > { %895 = vmatpush.bf16.msra.mxu1 %v3680_v4  ;;  %854 = vmatpush.bf16.msrb.mxu2 %v3604_v8  ;;  %v5105_v4 = vld [vmem:[%s7571_s3 + $0x204] sm:$0xf]  ;;  %v3628_v6 = vor.u32 %v5122_v3, %v3627_v1  ;;  %v3629_v9 = vld [vmem:[%s7571_s3 + $0x288] sm:$0xf0]  ;;  %v5088_v23 = vld [vmem:[%s7571_s3 + $0x174] sm:$0xf0] }
  0x39   : > { %v3568_v7 = vor.u32 %v5105_v4, %v3565_v5  ;;  %v5121_v8 = vld [vmem:[%s7571_s3 + $0x284] sm:$0xf]  ;;  %v3749_v27 = vld [vmem:[%s7571_s3 + $0x178] sm:$0xf0]  ;;  %v5103_v28 = vld [vmem:[%s7571_s3 + $0x1f4] sm:$0xf] }
  0x3a   : > { %868 = vmatpush.bf16.msrb.mxu3 %v3668_v14  ;;  %v3632_v10 = vor.u32 %v5121_v8, %v3629_v9  ;;  %v321_v14 = vperm.slane %v319_v11, 0  ;;  %v5086_v39 = vld [vmem:[%s7571_s3 + $0x164] sm:$0xf0]  ;;  %v5085_v44 = vld [vmem:[%s7571_s3 + $0x164] sm:$0xf] }
  0x3b   : > { %882 = vmatpush.bf16.msra.mxu0 %v3608_v15  ;;  %v322_v15 = vperm.slane %v319_v11, 1  ;;  %v5102_v43 = vld [vmem:[%s7571_s3 + $0x1e4] sm:$0xf0]  ;;  %v3741_v45 = vld [vmem:[%s7571_s3 + $0x168] sm:$0xf0] }
  0x3c   : > { %896 = vmatpush.bf16.msra.mxu1 %v3672_v16  ;;  %855 = vmatpush.bf16.msrb.mxu2 %v3596_v20  ;;  %v3747_v20 = vld [vmem:[%s7571_s3 + $0x170] sm:$0xf]  ;;  %v5084_v51 = vld [vmem:[%s7571_s3 + $0x154] sm:$0xf0]  ;;  %v3744_v52 = vor.u32 %v5085_v44, %v3741_v45  ;;  %v5083_v56 = vld [vmem:[%s7571_s3 + $0x154] sm:$0xf] }
  0x3d   : > { %v3748_v36 = vor.u32 %v5088_v23, %v3747_v20  ;;  %v5100_v55 = vld [vmem:[%s7571_s3 + $0x1d4] sm:$0xf0]  ;;  %v3733_v57 = vld [vmem:[%s7571_s3 + $0x158] sm:$0xf0]  ;;  %v5082_v63 = vld [vmem:[%s7571_s3 + $0x144] sm:$0xf0] }
  0x3e   : > { %869 = vmatpush.bf16.msrb.mxu3 %v3660_v24  ;;  %v3811_v24 = vld [vmem:[%s7571_s3 + $0x1f0] sm:$0xf]  ;;  %v3736_v0 = vor.u32 %v5083_v56, %v3733_v57  ;;  %v5098_v3 = vld [vmem:[%s7571_s3 + $0x1c4] sm:$0xf0]  ;;  %v5081_v4 = vld [vmem:[%s7571_s3 + $0x144] sm:$0xf] }
  0x3f   : > { %883 = vmatpush.bf16.msra.mxu0 %v3600_v25  ;;  %v5104_v25 = vld [vmem:[%s7571_s3 + $0x1f4] sm:$0xf0]  ;;  %v3725_v5 = vld [vmem:[%s7571_s3 + $0x148] sm:$0xf0]  ;;  %v5078_v23 = vld [vmem:[%s7571_s3 + $0x124] sm:$0xf0] }
  0x40   : > { %897 = vmatpush.bf16.msra.mxu1 %v3664_v26  ;;  %856 = vmatpush.bf16.msrb.mxu2 %v3588_v30  ;;  %v5087_v26 = vld [vmem:[%s7571_s3 + $0x174] sm:$0xf]  ;;  %v5080_v11 = vld [vmem:[%s7571_s3 + $0x134] sm:$0xf0]  ;;  %v3765_v45 = vld [vmem:[%s7571_s3 + $0x198] sm:$0xf0] }
  0x41   : > { %v3752_v40 = vor.u32 %v5087_v26, %v3749_v27  ;;  %v3771_v26 = vld [vmem:[%s7571_s3 + $0x1a0] sm:$0xf]  ;;  %v5094_v27 = vld [vmem:[%s7571_s3 + $0x1a4] sm:$0xf0]  ;;  %v5091_v44 = vld [vmem:[%s7571_s3 + $0x194] sm:$0xf] }
  0x42   : > { %870 = vmatpush.bf16.msrb.mxu3 %v3652_v33  ;;  %v3813_v33 = vld [vmem:[%s7571_s3 + $0x1f8] sm:$0xf0]  ;;  %v5089_v56 = vld [vmem:[%s7571_s3 + $0x184] sm:$0xf]  ;;  %v3757_v57 = vld [vmem:[%s7571_s3 + $0x188] sm:$0xf0] }
  0x43   : > { %884 = vmatpush.bf16.msra.mxu0 %v3592_v37  ;;  %v3812_v37 = vor.u32 %v5104_v25, %v3811_v24  ;;  %v3816_v41 = vor.u32 %v5103_v28, %v3813_v33  ;;  %v5077_v28 = vld [vmem:[%s7571_s3 + $0x124] sm:$0xf]  ;;  %v3772_v33 = vor.u32 %v5094_v27, %v3771_v26  ;;  %v3947_v26 = vld [vmem:[%s7571_s3 + $0x3c0] sm:$0xf]  ;;  %v5162_v27 = vld [vmem:[%s7571_s3 + $0x3c4] sm:$0xf0] }
  0x44   : > { %898 = vmatpush.bf16.msra.mxu1 %v3656_v38  ;;  %857 = vmatpush.bf16.msrb.mxu2 %v3580_v42  ;;  %v3739_v38 = vld [vmem:[%s7571_s3 + $0x160] sm:$0xf] }
  0x45   : > { %v3803_v42 = vld [vmem:[%s7571_s3 + $0x1e0] sm:$0xf]  ;;  %v3740_v48 = vor.u32 %v5086_v39, %v3739_v38 }
  0x46   : > { %871 = vmatpush.bf16.msrb.mxu3 %v3644_v46  ;;  %v5101_v46 = vld [vmem:[%s7571_s3 + $0x1e4] sm:$0xf]  ;;  %v3804_v49 = vor.u32 %v5102_v43, %v3803_v42  ;;  %v5075_v42 = vld [vmem:[%s7571_s3 + $0x114] sm:$0xf]  ;;  %v3701_v43 = vld [vmem:[%s7571_s3 + $0x118] sm:$0xf0] }
  0x47   : > { %885 = vmatpush.bf16.msra.mxu0 %v3584_v47  ;;  %v3805_v47 = vld [vmem:[%s7571_s3 + $0x1e8] sm:$0xf0] }
  0x48   : > { %899 = vmatpush.bf16.msra.mxu1 %v3648_v50  ;;  %858 = vmatpush.bf16.msrb.mxu2 %v3572_v54  ;;  %v3731_v50 = vld [vmem:[%s7571_s3 + $0x150] sm:$0xf]  ;;  %v3808_v53 = vor.u32 %v5101_v46, %v3805_v47 }
  0x49   : > { %v3795_v54 = vld [vmem:[%s7571_s3 + $0x1d0] sm:$0xf]  ;;  %v3732_v60 = vor.u32 %v5084_v51, %v3731_v50  ;;  %v3755_v50 = vld [vmem:[%s7571_s3 + $0x180] sm:$0xf]  ;;  %v3704_v51 = vor.u32 %v5075_v42, %v3701_v43  ;;  %v5159_v42 = vld [vmem:[%s7571_s3 + $0x3b4] sm:$0xf] }
  0x4a   : > { %872 = vmatpush.bf16.msrb.mxu3 %v3636_v58  ;;  %v5099_v58 = vld [vmem:[%s7571_s3 + $0x1d4] sm:$0xf]  ;;  %v3796_v61 = vor.u32 %v5100_v55, %v3795_v54  ;;  %v5073_v54 = vld [vmem:[%s7571_s3 + $0x104] sm:$0xf]  ;;  %v3693_v55 = vld [vmem:[%s7571_s3 + $0x108] sm:$0xf0] }
  0x4b   : > { %886 = vmatpush.bf16.msra.mxu0 %v3576_v59  ;;  %v3797_v59 = vld [vmem:[%s7571_s3 + $0x1d8] sm:$0xf0] }
  0x4c   : > { %900 = vmatpush.bf16.msra.mxu1 %v3640_v62  ;;  %859 = vmatpush.bf16.msrb.mxu2 %v3564_v2  ;;  %v3723_v62 = vld [vmem:[%s7571_s3 + $0x140] sm:$0xf]  ;;  %v3800_v1 = vor.u32 %v5099_v58, %v3797_v59  ;;  %v3971_v58 = vld [vmem:[%s7571_s3 + $0x3f0] sm:$0xf]  ;;  %v5168_v59 = vld [vmem:[%s7571_s3 + $0x3f4] sm:$0xf0] }
  0x4d   : > { %v3787_v2 = vld [vmem:[%s7571_s3 + $0x1c0] sm:$0xf]  ;;  %v3724_v8 = vor.u32 %v5082_v63, %v3723_v62 }
  0x4e   : > { %873 = vmatpush.bf16.msrb.mxu3 %v3628_v6  ;;  %v5097_v6 = vld [vmem:[%s7571_s3 + $0x1c4] sm:$0xf]  ;;  %v3788_v9 = vor.u32 %v5098_v3, %v3787_v2  ;;  %v3972_v2 = vor.u32 %v5168_v59, %v3971_v58  ;;  %v3875_v58 = vld [vmem:[%s7571_s3 + $0x330] sm:$0xf]  ;;  %v5144_v59 = vld [vmem:[%s7571_s3 + $0x334] sm:$0xf0] }
  0x4f   : > { %887 = vmatpush.bf16.msra.mxu0 %v3568_v7  ;;  %v3789_v7 = vld [vmem:[%s7571_s3 + $0x1c8] sm:$0xf0] }
  0x50   : > { %901 = vmatpush.bf16.msra.mxu1 %v3632_v10  ;;  %v3715_v10 = vld [vmem:[%s7571_s3 + $0x130] sm:$0xf] }
  0x51   : > { %v3716_v20 = vor.u32 %v5080_v11, %v3715_v10  ;;  %v5151_v10 = vld [vmem:[%s7571_s3 + $0x374] sm:$0xf] }
  0x92   : > { %v353_v12 = vpop.f32.mrf.mxu0  ;;  %v367_v13 = vpop.f32.mrf.mxu1 }
  0x93   : > { %v354_v16 = vadd.f32 %v353_v12, %v321_v14  ;;  %v368_v17 = vadd.f32 %v367_v13, %v322_v15  ;;  %v3728_v12 = vor.u32 %v5081_v4, %v3725_v5  ;;  %v3792_v13 = vor.u32 %v5097_v6, %v3789_v7  ;;  %v3963_v4 = vld [vmem:[%s7571_s3 + $0x3e0] sm:$0xf]  ;;  %v5166_v5 = vld [vmem:[%s7571_s3 + $0x3e4] sm:$0xf0]  ;;  %v5165_v6 = vld [vmem:[%s7571_s3 + $0x3e4] sm:$0xf] }
  0x94   : > { %v3964_v7 = vor.u32 %v5166_v5, %v3963_v4  ;;  %v3925_v4 = vld [vmem:[%s7571_s3 + $0x398] sm:$0xf0] }
  0x95   : > { %v372_v29 = vmax.f32 %v354_v16, 0.0  ;;  %v373_v30 = vmax.f32 %v368_v17, 0.0  ;;  %v5079_v16 = vld [vmem:[%s7571_s3 + $0x134] sm:$0xf]  ;;  %v3717_v17 = vld [vmem:[%s7571_s3 + $0x138] sm:$0xf0] }
  0x96   : > { %v3720_v24 = vor.u32 %v5079_v16, %v3717_v17  ;;  %v5163_v16 = vld [vmem:[%s7571_s3 + $0x3d4] sm:$0xf] }
  0x9a   : > { %v355_v18 = vpop.f32.mrf.mxu0  ;;  %v369_v19 = vpop.f32.mrf.mxu1 }
  0x9b   : > { %v356_v21 = vadd.f32 %v355_v18, %v321_v14  ;;  %v370_v22 = vadd.f32 %v369_v19, %v322_v15  ;;  %v3779_v14 = vld [vmem:[%s7571_s3 + $0x1b0] sm:$0xf]  ;;  %v5096_v15 = vld [vmem:[%s7571_s3 + $0x1b4] sm:$0xf0]  ;;  %v5095_v18 = vld [vmem:[%s7571_s3 + $0x1b4] sm:$0xf] }
  0x9c   : > { %v3781_v19 = vld [vmem:[%s7571_s3 + $0x1b8] sm:$0xf0] }
  0x9d   : > { %v374_v31 = vmax.f32 %v356_v21, 0.0  ;;  %v375_v32 = vmax.f32 %v370_v22, 0.0  ;;  %v3780_v21 = vor.u32 %v5096_v15, %v3779_v14  ;;  %v3707_v22 = vld [vmem:[%s7571_s3 + $0x120] sm:$0xf]  ;;  %v3784_v25 = vor.u32 %v5095_v18, %v3781_v19  ;;  %v3955_v14 = vld [vmem:[%s7571_s3 + $0x3d0] sm:$0xf] }
  0x9e   : > { %v5164_v15 = vld [vmem:[%s7571_s3 + $0x3d4] sm:$0xf0]  ;;  %v3957_v18 = vld [vmem:[%s7571_s3 + $0x3d8] sm:$0xf0] }
  0x9f   : > { %v5888_v34 = vpack.c.bf16 %v374_v31, %v372_v29  ;;  %v5890_v35 = vpack.c.bf16 %v375_v32, %v373_v30  ;;  %v3709_v29 = vld [vmem:[%s7571_s3 + $0x128] sm:$0xf0]  ;;  %v5093_v30 = vld [vmem:[%s7571_s3 + $0x1a4] sm:$0xf]  ;;  %v3708_v32 = vor.u32 %v5078_v23, %v3707_v22  ;;  %v3956_v17 = vor.u32 %v5164_v15, %v3955_v14  ;;  %v4163_v15 = vld [vmem:[%s7571_s3 + $0x5f0] sm:$0xf] }
  0xa0   : > { %v3773_v31 = vld [vmem:[%s7571_s3 + $0x1a8] sm:$0xf0]  ;;  %v3712_v38 = vor.u32 %v5077_v28, %v3709_v29  ;;  %v3960_v19 = vor.u32 %v5163_v16, %v3957_v18  ;;  %v5149_v22 = vld [vmem:[%s7571_s3 + $0x364] sm:$0xf]  ;;  %v3948_v29 = vor.u32 %v5162_v27, %v3947_v26  ;;  %v5232_v16 = vld [vmem:[%s7571_s3 + $0x5f4] sm:$0xf0] }
  0xa1   : > { %578 = vmatmul.bf16.vlgmr.msra.gmra.mxu2 %v5888_v34  ;;  %592 = vmatmul.bf16.vlgmr.msra.gmra.mxu3 %v5890_v35  ;;  %v3776_v39 = vor.u32 %v5093_v30, %v3773_v31  ;;  %v5161_v28 = vld [vmem:[%s7571_s3 + $0x3c4] sm:$0xf]  ;;  %v3949_v30 = vld [vmem:[%s7571_s3 + $0x3c8] sm:$0xf0]  ;;  %v4164_v18 = vor.u32 %v5232_v16, %v4163_v15  ;;  %v4133_v16 = vld [vmem:[%s7571_s3 + $0x5b8] sm:$0xf0] }
  0xa2   : > { %606 = vmatmul.bf16.vlgmr.msrb.gmra.mxu0 %v5888_v34  ;;  %620 = vmatmul.bf16.vlgmr.msrb.gmra.mxu1 %v5890_v35  ;;  %v3952_v31 = vor.u32 %v5161_v28, %v3949_v30  ;;  %v3917_v14 = vld [vmem:[%s7571_s3 + $0x388] sm:$0xf0]  ;;  %v4155_v28 = vld [vmem:[%s7571_s3 + $0x5e0] sm:$0xf]  ;;  %v5229_v30 = vld [vmem:[%s7571_s3 + $0x5e4] sm:$0xf] }
  0xa3   : > { %1086 = vmatpush.bf16.msra.mxu2 %v3748_v36  ;;  %1100 = vmatpush.bf16.msra.mxu3 %v3812_v37  ;;  %v3699_v36 = vld [vmem:[%s7571_s3 + $0x110] sm:$0xf]  ;;  %v5076_v37 = vld [vmem:[%s7571_s3 + $0x114] sm:$0xf0] }
  0xa4   : > { %1114 = vmatpush.bf16.msrb.mxu0 %v3752_v40  ;;  %1128 = vmatpush.bf16.msrb.mxu1 %v3816_v41  ;;  %v3763_v40 = vld [vmem:[%s7571_s3 + $0x190] sm:$0xf]  ;;  %v5092_v41 = vld [vmem:[%s7571_s3 + $0x194] sm:$0xf0]  ;;  %v3700_v46 = vor.u32 %v5076_v37, %v3699_v36  ;;  %v5147_v36 = vld [vmem:[%s7571_s3 + $0x354] sm:$0xf] }
  0xa5   : > { %v3764_v47 = vor.u32 %v5092_v41, %v3763_v40  ;;  %v3939_v40 = vld [vmem:[%s7571_s3 + $0x3b0] sm:$0xf]  ;;  %v5160_v41 = vld [vmem:[%s7571_s3 + $0x3b4] sm:$0xf0] }
  0xa6   : > { %v3940_v43 = vor.u32 %v5160_v41, %v3939_v40  ;;  %v3853_v40 = vld [vmem:[%s7571_s3 + $0x308] sm:$0xf0]  ;;  %v4099_v41 = vld [vmem:[%s7571_s3 + $0x570] sm:$0xf] }
  0xa7   : > { %1087 = vmatpush.bf16.msra.mxu2 %v3740_v48  ;;  %1101 = vmatpush.bf16.msra.mxu3 %v3804_v49  ;;  %v3691_v48 = vld [vmem:[%s7571_s3 + $0x100] sm:$0xf]  ;;  %v5074_v49 = vld [vmem:[%s7571_s3 + $0x104] sm:$0xf0] }
  0xa8   : > { %1115 = vmatpush.bf16.msrb.mxu0 %v3744_v52  ;;  %1129 = vmatpush.bf16.msrb.mxu1 %v3808_v53  ;;  %v3768_v52 = vor.u32 %v5091_v44, %v3765_v45  ;;  %v5090_v53 = vld [vmem:[%s7571_s3 + $0x184] sm:$0xf0]  ;;  %v3692_v62 = vor.u32 %v5074_v49, %v3691_v48  ;;  %v3941_v44 = vld [vmem:[%s7571_s3 + $0x3b8] sm:$0xf0]  ;;  %v5145_v48 = vld [vmem:[%s7571_s3 + $0x344] sm:$0xf] }
  0xa9   : > { %v3756_v63 = vor.u32 %v5090_v53, %v3755_v50  ;;  %v3944_v45 = vor.u32 %v5159_v42, %v3941_v44  ;;  %v3885_v50 = vld [vmem:[%s7571_s3 + $0x348] sm:$0xf0]  ;;  %v5158_v53 = vld [vmem:[%s7571_s3 + $0x3a4] sm:$0xf0]  ;;  %v5215_v44 = vld [vmem:[%s7571_s3 + $0x574] sm:$0xf] }
  0xab   : > { %1088 = vmatpush.bf16.msra.mxu2 %v3732_v60  ;;  %1102 = vmatpush.bf16.msra.mxu3 %v3796_v61  ;;  %v5167_v60 = vld [vmem:[%s7571_s3 + $0x3f4] sm:$0xf]  ;;  %v3973_v61 = vld [vmem:[%s7571_s3 + $0x3f8] sm:$0xf0] }
  0xac   : > { %1116 = vmatpush.bf16.msrb.mxu0 %v3736_v0  ;;  %1130 = vmatpush.bf16.msrb.mxu1 %v3800_v1  ;;  %v3696_v0 = vor.u32 %v5073_v54, %v3693_v55  ;;  %v3760_v1 = vor.u32 %v5089_v56, %v3757_v57  ;;  %v3976_v3 = vor.u32 %v5167_v60, %v3973_v61  ;;  %v5157_v54 = vld [vmem:[%s7571_s3 + $0x3a4] sm:$0xf]  ;;  %v3933_v56 = vld [vmem:[%s7571_s3 + $0x3a8] sm:$0xf0]  ;;  %v5143_v60 = vld [vmem:[%s7571_s3 + $0x334] sm:$0xf] }
  0xad   : > { %v3936_v57 = vor.u32 %v5157_v54, %v3933_v56  ;;  %v3876_v61 = vor.u32 %v5144_v59, %v3875_v58  ;;  %v4149_v54 = vld [vmem:[%s7571_s3 + $0x5d8] sm:$0xf0]  ;;  %v4091_v56 = vld [vmem:[%s7571_s3 + $0x560] sm:$0xf]  ;;  %v5213_v58 = vld [vmem:[%s7571_s3 + $0x564] sm:$0xf] }
  0xaf   : > { %1089 = vmatpush.bf16.msra.mxu2 %v3724_v8  ;;  %1103 = vmatpush.bf16.msra.mxu3 %v3788_v9  ;;  %v3965_v8 = vld [vmem:[%s7571_s3 + $0x3e8] sm:$0xf0]  ;;  %v5152_v9 = vld [vmem:[%s7571_s3 + $0x374] sm:$0xf0] }
  0xb0   : > { %1117 = vmatpush.bf16.msrb.mxu0 %v3728_v12  ;;  %1131 = vmatpush.bf16.msrb.mxu1 %v3792_v13  ;;  %v3909_v12 = vld [vmem:[%s7571_s3 + $0x378] sm:$0xf0] }
  0xb1   : > { %860 = vmatmul.bf16.vlgmr.msrb.gmra.mxu2 %v5888_v34  ;;  %874 = vmatmul.bf16.vlgmr.msrb.gmra.mxu3 %v5890_v35  ;;  %v3912_v13 = vor.u32 %v5151_v10, %v3909_v12  ;;  %v3915_v10 = vld [vmem:[%s7571_s3 + $0x380] sm:$0xf]  ;;  %v5153_v12 = vld [vmem:[%s7571_s3 + $0x384] sm:$0xf] }
  0xb2   : > { %888 = vmatmul.bf16.vlgmr.msra.gmra.mxu0 %v5888_v34  ;;  %902 = vmatmul.bf16.vlgmr.msra.gmra.mxu1 %v5890_v35 }
  0xb3   : > { %1090 = vmatpush.bf16.msra.mxu2 %v3716_v20  ;;  %1104 = vmatpush.bf16.msra.mxu3 %v3780_v21  ;;  %v3899_v20 = vld [vmem:[%s7571_s3 + $0x360] sm:$0xf]  ;;  %v5150_v21 = vld [vmem:[%s7571_s3 + $0x364] sm:$0xf0] }
  0xb4   : > { %1118 = vmatpush.bf16.msrb.mxu0 %v3720_v24  ;;  %1132 = vmatpush.bf16.msrb.mxu1 %v3784_v25  ;;  %v3900_v23 = vor.u32 %v5150_v21, %v3899_v20  ;;  %v3901_v24 = vld [vmem:[%s7571_s3 + $0x368] sm:$0xf0]  ;;  %v4165_v20 = vld [vmem:[%s7571_s3 + $0x5f8] sm:$0xf0]  ;;  %v3859_v21 = vld [vmem:[%s7571_s3 + $0x310] sm:$0xf] }
  0xb5   : > { %v3904_v25 = vor.u32 %v5149_v22, %v3901_v24  ;;  %v5139_v24 = vld [vmem:[%s7571_s3 + $0x314] sm:$0xf] }
  0xb7   : > { %1091 = vmatpush.bf16.msra.mxu2 %v3708_v32  ;;  %1105 = vmatpush.bf16.msra.mxu3 %v3772_v33  ;;  %v3891_v32 = vld [vmem:[%s7571_s3 + $0x350] sm:$0xf]  ;;  %v5148_v33 = vld [vmem:[%s7571_s3 + $0x354] sm:$0xf0] }
  0xb8   : > { %1119 = vmatpush.bf16.msrb.mxu0 %v3712_v38  ;;  %1133 = vmatpush.bf16.msrb.mxu1 %v3776_v39  ;;  %v3892_v37 = vor.u32 %v5148_v33, %v3891_v32  ;;  %v3893_v38 = vld [vmem:[%s7571_s3 + $0x358] sm:$0xf0]  ;;  %v4157_v32 = vld [vmem:[%s7571_s3 + $0x5e8] sm:$0xf0]  ;;  %v3851_v33 = vld [vmem:[%s7571_s3 + $0x300] sm:$0xf] }
  0xb9   : > { %v3896_v39 = vor.u32 %v5147_v36, %v3893_v38  ;;  %v5138_v36 = vld [vmem:[%s7571_s3 + $0x304] sm:$0xf0] }
  0xba   : > { %v3852_v38 = vor.u32 %v5138_v36, %v3851_v33  ;;  %v5208_v33 = vld [vmem:[%s7571_s3 + $0x534] sm:$0xf0]  ;;  %v5207_v36 = vld [vmem:[%s7571_s3 + $0x534] sm:$0xf] }
  0xbb   : > { %1092 = vmatpush.bf16.msra.mxu2 %v3700_v46  ;;  %1106 = vmatpush.bf16.msra.mxu3 %v3764_v47  ;;  %v3883_v46 = vld [vmem:[%s7571_s3 + $0x340] sm:$0xf]  ;;  %v5146_v47 = vld [vmem:[%s7571_s3 + $0x344] sm:$0xf0] }
  0xbc   : > { %1120 = vmatpush.bf16.msrb.mxu0 %v3704_v51  ;;  %1134 = vmatpush.bf16.msrb.mxu1 %v3768_v52  ;;  %v3884_v49 = vor.u32 %v5146_v47, %v3883_v46  ;;  %v3888_v51 = vor.u32 %v5145_v48, %v3885_v50  ;;  %v3931_v52 = vld [vmem:[%s7571_s3 + $0x3a0] sm:$0xf]  ;;  %v4147_v48 = vld [vmem:[%s7571_s3 + $0x5d0] sm:$0xf] }
  0xbd   : > { %v3932_v55 = vor.u32 %v5158_v53, %v3931_v52  ;;  %v5227_v53 = vld [vmem:[%s7571_s3 + $0x5d4] sm:$0xf] }
  0xbf   : > { %1093 = vmatpush.bf16.msra.mxu2 %v3692_v62  ;;  %1107 = vmatpush.bf16.msra.mxu3 %v3756_v63  ;;  %v3877_v62 = vld [vmem:[%s7571_s3 + $0x338] sm:$0xf0] }
  0xc0   : > { %1121 = vmatpush.bf16.msrb.mxu0 %v3696_v0  ;;  %1135 = vmatpush.bf16.msrb.mxu1 %v3760_v1  ;;  %v3880_v63 = vor.u32 %v5143_v60, %v3877_v62  ;;  %v3923_v0 = vld [vmem:[%s7571_s3 + $0x390] sm:$0xf]  ;;  %v5156_v1 = vld [vmem:[%s7571_s3 + $0x394] sm:$0xf0]  ;;  %v4093_v60 = vld [vmem:[%s7571_s3 + $0x568] sm:$0xf0] }
  0xc1   : > { %v4139_v62 = vld [vmem:[%s7571_s3 + $0x5c0] sm:$0xf] }
  0xc2   : > { %1094 = vmatmul.bf16.vlgmr.msra.gmra.mxu2 %v5888_v34  ;;  %1108 = vmatmul.bf16.vlgmr.msra.gmra.mxu3 %v5890_v35 }
  0xc3   : > { %1385 = vmatpush.bf16.msrb.mxu3 %v3972_v2  ;;  %1122 = vmatmul.bf16.vlgmr.msrb.gmra.mxu0 %v5888_v34  ;;  %v3968_v34 = vor.u32 %v5165_v6, %v3965_v8  ;;  %v5155_v2 = vld [vmem:[%s7571_s3 + $0x394] sm:$0xf]  ;;  %v3867_v6 = vld [vmem:[%s7571_s3 + $0x320] sm:$0xf]  ;;  %v5141_v8 = vld [vmem:[%s7571_s3 + $0x324] sm:$0xf] }
  0xc4   : > { %1413 = vmatpush.bf16.msra.mxu1 %v3976_v3  ;;  %1399 = vmatpush.bf16.msra.mxu0 %v3912_v13  ;;  %v3924_v3 = vor.u32 %v5156_v1, %v3923_v0  ;;  %v3928_v5 = vor.u32 %v5155_v2, %v3925_v4  ;;  %v5225_v1 = vld [vmem:[%s7571_s3 + $0x5c4] sm:$0xf]  ;;  %v4141_v2 = vld [vmem:[%s7571_s3 + $0x5c8] sm:$0xf0] }
  0xc5   : > { %1136 = vmatmul.bf16.vlgmr.msrb.gmra.mxu1 %v5890_v35  ;;  %v3907_v35 = vld [vmem:[%s7571_s3 + $0x370] sm:$0xf] }
  0xc6   : > { %v3908_v11 = vor.u32 %v5152_v9, %v3907_v35  ;;  %v3869_v35 = vld [vmem:[%s7571_s3 + $0x328] sm:$0xf0] }
  0xc7   : > { %1386 = vmatpush.bf16.msrb.mxu3 %v3964_v7  ;;  %v5142_v7 = vld [vmem:[%s7571_s3 + $0x324] sm:$0xf0]  ;;  %v3872_v9 = vor.u32 %v5141_v8, %v3869_v35  ;;  %v5211_v8 = vld [vmem:[%s7571_s3 + $0x554] sm:$0xf]  ;;  %v4085_v35 = vld [vmem:[%s7571_s3 + $0x558] sm:$0xf0] }
  0xc8   : > { %1414 = vmatpush.bf16.msra.mxu1 %v3968_v34  ;;  %1371 = vmatpush.bf16.msrb.mxu2 %v3908_v11  ;;  %v3868_v34 = vor.u32 %v5142_v7, %v3867_v6  ;;  %v5154_v11 = vld [vmem:[%s7571_s3 + $0x384] sm:$0xf0]  ;;  %v4083_v6 = vld [vmem:[%s7571_s3 + $0x550] sm:$0xf]  ;;  %v5212_v7 = vld [vmem:[%s7571_s3 + $0x554] sm:$0xf0] }
  0xc9   : > { %1400 = vmatpush.bf16.msra.mxu0 %v3904_v25  ;;  %v3916_v13 = vor.u32 %v5154_v11, %v3915_v10  ;;  %v3861_v25 = vld [vmem:[%s7571_s3 + $0x318] sm:$0xf0]  ;;  %v4131_v10 = vld [vmem:[%s7571_s3 + $0x5b0] sm:$0xf]  ;;  %v5224_v11 = vld [vmem:[%s7571_s3 + $0x5b4] sm:$0xf0] }
  0xca   : > { %v3864_v27 = vor.u32 %v5139_v24, %v3861_v25  ;;  %v4132_v15 = vor.u32 %v5224_v11, %v4131_v10  ;;  %v4123_v24 = vld [vmem:[%s7571_s3 + $0x5a0] sm:$0xf]  ;;  %v5222_v25 = vld [vmem:[%s7571_s3 + $0x5a4] sm:$0xf0] }
  0xcb   : > { %1387 = vmatpush.bf16.msrb.mxu3 %v3956_v17  ;;  %v3920_v17 = vor.u32 %v5153_v12, %v3917_v14  ;;  %v5223_v12 = vld [vmem:[%s7571_s3 + $0x5b4] sm:$0xf] }
  0xcc   : > { %1415 = vmatpush.bf16.msra.mxu1 %v3960_v19  ;;  %1372 = vmatpush.bf16.msrb.mxu2 %v3900_v23  ;;  %v5231_v19 = vld [vmem:[%s7571_s3 + $0x5f4] sm:$0xf]  ;;  %v5140_v23 = vld [vmem:[%s7571_s3 + $0x314] sm:$0xf0] }
  0xcd   : > { %1401 = vmatpush.bf16.msra.mxu0 %v3896_v39  ;;  %v4168_v22 = vor.u32 %v5231_v19, %v4165_v20  ;;  %v3860_v26 = vor.u32 %v5140_v23, %v3859_v21  ;;  %v5137_v39 = vld [vmem:[%s7571_s3 + $0x304] sm:$0xf]  ;;  %v5210_v19 = vld [vmem:[%s7571_s3 + $0x544] sm:$0xf0] }
  0xce   : > { %v3856_v42 = vor.u32 %v5137_v39, %v3853_v40  ;;  %v5209_v20 = vld [vmem:[%s7571_s3 + $0x544] sm:$0xf]  ;;  %v4115_v40 = vld [vmem:[%s7571_s3 + $0x590] sm:$0xf] }
  0xcf   : > { %1388 = vmatpush.bf16.msrb.mxu3 %v3948_v29  ;;  %v5230_v29 = vld [vmem:[%s7571_s3 + $0x5e4] sm:$0xf0] }
  0xd0   : > { %1416 = vmatpush.bf16.msra.mxu1 %v3952_v31  ;;  %1373 = vmatpush.bf16.msrb.mxu2 %v3892_v37  ;;  %v4156_v31 = vor.u32 %v5230_v29, %v4155_v28  ;;  %v4160_v37 = vor.u32 %v5229_v30, %v4157_v32  ;;  %v4125_v28 = vld [vmem:[%s7571_s3 + $0x5a8] sm:$0xf0]  ;;  %v4067_v32 = vld [vmem:[%s7571_s3 + $0x530] sm:$0xf] }
  0xd1   : > { %1402 = vmatpush.bf16.msra.mxu0 %v3888_v51 }
  0xd3   : > { %1389 = vmatpush.bf16.msrb.mxu3 %v3940_v43  ;;  %v5216_v43 = vld [vmem:[%s7571_s3 + $0x574] sm:$0xf0] }
  0xd4   : > { %1417 = vmatpush.bf16.msra.mxu1 %v3944_v45  ;;  %1374 = vmatpush.bf16.msrb.mxu2 %v3884_v49  ;;  %v4101_v45 = vld [vmem:[%s7571_s3 + $0x578] sm:$0xf0]  ;;  %v4100_v46 = vor.u32 %v5216_v43, %v4099_v41  ;;  %v5228_v49 = vld [vmem:[%s7571_s3 + $0x5d4] sm:$0xf0] }
  0xd5   : > { %1403 = vmatpush.bf16.msra.mxu0 %v3880_v63  ;;  %v4104_v47 = vor.u32 %v5215_v44, %v4101_v45  ;;  %v4148_v52 = vor.u32 %v5228_v49, %v4147_v48  ;;  %v5226_v63 = vld [vmem:[%s7571_s3 + $0x5c4] sm:$0xf0]  ;;  %v5220_v41 = vld [vmem:[%s7571_s3 + $0x594] sm:$0xf0]  ;;  %v4059_v49 = vld [vmem:[%s7571_s3 + $0x520] sm:$0xf] }
  0xd6   : > { %v4140_v0 = vor.u32 %v5226_v63, %v4139_v62  ;;  %v4116_v45 = vor.u32 %v5220_v41, %v4115_v40 }
  0xd7   : > { %1390 = vmatpush.bf16.msrb.mxu3 %v3932_v55  ;;  %v4152_v55 = vor.u32 %v5227_v53, %v4149_v54  ;;  %v5205_v53 = vld [vmem:[%s7571_s3 + $0x524] sm:$0xf] }
  0xd8   : > { %1418 = vmatpush.bf16.msra.mxu1 %v3936_v57  ;;  %1375 = vmatpush.bf16.msrb.mxu2 %v3876_v61  ;;  %v5214_v57 = vld [vmem:[%s7571_s3 + $0x564] sm:$0xf0]  ;;  %v4096_v61 = vor.u32 %v5213_v58, %v4093_v60  ;;  %v5217_v60 = vld [vmem:[%s7571_s3 + $0x584] sm:$0xf] }
  0xd9   : > { %1404 = vmatpush.bf16.msra.mxu0 %v3872_v9  ;;  %v4092_v59 = vor.u32 %v5214_v57, %v4091_v56  ;;  %v4088_v9 = vor.u32 %v5211_v8, %v4085_v35  ;;  %v4107_v57 = vld [vmem:[%s7571_s3 + $0x580] sm:$0xf]  ;;  %v5218_v58 = vld [vmem:[%s7571_s3 + $0x584] sm:$0xf0] }
  0xdb   : > { %1391 = vmatpush.bf16.msrb.mxu3 %v3924_v3 }
  0xdc   : > { %1419 = vmatpush.bf16.msra.mxu1 %v3928_v5  ;;  %1376 = vmatpush.bf16.msrb.mxu2 %v3868_v34  ;;  %v4144_v5 = vor.u32 %v5225_v1, %v4141_v2  ;;  %v4084_v34 = vor.u32 %v5212_v7, %v4083_v6  ;;  %v5204_v6 = vld [vmem:[%s7571_s3 + $0x514] sm:$0xf0]  ;;  %v5203_v7 = vld [vmem:[%s7571_s3 + $0x514] sm:$0xf] }
  0xdd   : > { %1405 = vmatpush.bf16.msra.mxu0 %v3864_v27  ;;  %v5221_v27 = vld [vmem:[%s7571_s3 + $0x5a4] sm:$0xf] }
  0xdf   : > { %1392 = vmatpush.bf16.msrb.mxu3 %v3916_v13 }
  0xe0   : > { %1420 = vmatpush.bf16.msra.mxu1 %v3920_v17  ;;  %1377 = vmatpush.bf16.msrb.mxu2 %v3860_v26  ;;  %v4136_v17 = vor.u32 %v5223_v12, %v4133_v16  ;;  %v4124_v26 = vor.u32 %v5222_v25, %v4123_v24 }
  0xe1   : > { %1406 = vmatpush.bf16.msra.mxu0 %v3856_v42  ;;  %v5219_v42 = vld [vmem:[%s7571_s3 + $0x594] sm:$0xf] }
  0xe3   : > { %1667 = vmatpush.bf16.msra.mxu3 %v4164_v18  ;;  %v4075_v18 = vld [vmem:[%s7571_s3 + $0x540] sm:$0xf] }
  0xe4   : > { %1695 = vmatpush.bf16.msrb.mxu1 %v4168_v22  ;;  %1378 = vmatpush.bf16.msrb.mxu2 %v3852_v38  ;;  %v4076_v21 = vor.u32 %v5210_v19, %v4075_v18  ;;  %v4077_v22 = vld [vmem:[%s7571_s3 + $0x548] sm:$0xf0]  ;;  %v4069_v38 = vld [vmem:[%s7571_s3 + $0x538] sm:$0xf0] }
  0xe5   : > { %1681 = vmatpush.bf16.msrb.mxu0 %v4104_v47  ;;  %v4080_v23 = vor.u32 %v5209_v20, %v4077_v22  ;;  %v4072_v39 = vor.u32 %v5207_v36, %v4069_v38  ;;  %v283_v47 = vlaneseq  ;;  %v908_v38 = vld [vmem:[%s7572_s4] ss:$4 sm:$0x3] }
  0xe7   : > { %1668 = vmatpush.bf16.msra.mxu3 %v4156_v31  ;;  %v4128_v31 = vor.u32 %v5221_v27, %v4125_v28  ;;  %v6448_v1 = vshrl.u32 %v283_v47, 7  ;;  %v1165_v47 = vperm.slane %v908_v38, 1 }
  0xe8   : > { %1696 = vmatpush.bf16.msrb.mxu1 %v4160_v37  ;;  %1653 = vmatpush.bf16.msra.mxu2 %v4100_v46  ;;  %v4068_v37 = vor.u32 %v5208_v33, %v4067_v32  ;;  %v4117_v46 = vld [vmem:[%s7571_s3 + $0x598] sm:$0xf0] }
  0xe9   : > { %1682 = vmatpush.bf16.msrb.mxu0 %v4096_v61  ;;  %v4120_v48 = vor.u32 %v5219_v42, %v4117_v46  ;;  %v4109_v61 = vld [vmem:[%s7571_s3 + $0x588] sm:$0xf0]  ;;  %vm913_vm2 = vcmp.lt.s32.totalorder %v6448_v1, 1  ;;  %vm1146_vm4 = vcmp.lt.s32.totalorder %v6448_v1, 7 }
  0xea   : > { %v4112_v2 = vor.u32 %v5217_v60, %v4109_v61 }
  0xeb   : > { %1669 = vmatpush.bf16.msra.mxu3 %v4148_v52  ;;  %v5206_v52 = vld [vmem:[%s7571_s3 + $0x524] sm:$0xf0] }
  0xec   : > { %1697 = vmatpush.bf16.msrb.mxu1 %v4152_v55  ;;  %1654 = vmatpush.bf16.msra.mxu2 %v4092_v59  ;;  %v4060_v54 = vor.u32 %v5206_v52, %v4059_v49  ;;  %v4061_v55 = vld [vmem:[%s7571_s3 + $0x528] sm:$0xf0]  ;;  %v4108_v59 = vor.u32 %v5218_v58, %v4107_v57 }
  0xed   : > { %1683 = vmatpush.bf16.msrb.mxu0 %v4088_v9  ;;  %v4064_v56 = vor.u32 %v5205_v53, %v4061_v55 }
  0xef   : > { %1670 = vmatpush.bf16.msra.mxu3 %v4140_v0 }
  0xf0   : > { %1698 = vmatpush.bf16.msrb.mxu1 %v4144_v5  ;;  %1655 = vmatpush.bf16.msra.mxu2 %v4084_v34  ;;  %v4051_v5 = vld [vmem:[%s7571_s3 + $0x510] sm:$0xf]  ;;  %v4053_v34 = vld [vmem:[%s7571_s3 + $0x518] sm:$0xf0] }
  0xf1   : > { %1684 = vmatpush.bf16.msrb.mxu0 %v4080_v23  ;;  %v4052_v8 = vor.u32 %v5204_v6, %v4051_v5  ;;  %v4056_v11 = vor.u32 %v5203_v7, %v4053_v34  ;;  %v1164_v7 = vperm.slane %v908_v38, 0  ;;  %v4278_v38 = vld [vmem:[%s7571_s3 + $0x4d8] sm:$0xf0] }
  0xf3   : > { %1671 = vmatpush.bf16.msra.mxu3 %v4132_v15  ;;  %v5202_v15 = vld [vmem:[%s7571_s3 + $0x504] sm:$0xf0] }
  0xf4   : > { %1699 = vmatpush.bf16.msrb.mxu1 %v4136_v17  ;;  %1656 = vmatpush.bf16.msra.mxu2 %v4076_v21 }
  0xf5   : > { %1685 = vmatpush.bf16.msrb.mxu0 %v4072_v39 }
  0xf7   : > { %1672 = vmatpush.bf16.msra.mxu3 %v4124_v26 }
  0xf8   : > { %1700 = vmatpush.bf16.msrb.mxu1 %v4128_v31  ;;  %1657 = vmatpush.bf16.msra.mxu2 %v4068_v37 }
  0xf9   : > { %1686 = vmatpush.bf16.msrb.mxu0 %v4064_v56 }
  0xfb   : > { %1673 = vmatpush.bf16.msra.mxu3 %v4116_v45 }
  0xfc   : > { %1701 = vmatpush.bf16.msrb.mxu1 %v4120_v48  ;;  %1658 = vmatpush.bf16.msra.mxu2 %v4060_v54 }
  0xfd   : > { %1687 = vmatpush.bf16.msrb.mxu0 %v4056_v11  ;;  %v5200_v11 = vld [vmem:[%s7571_s3 + $0x4f4] sm:$0xf0] }
  0xff   : > { %1674 = vmatpush.bf16.msra.mxu3 %v4108_v59 }
 0x100   : > { %1702 = vmatpush.bf16.msrb.mxu1 %v4112_v2  ;;  %1659 = vmatpush.bf16.msra.mxu2 %v4052_v8 }
 0x11f   : > { %v6306_v50 = vpop.f32.mrf.mxu0  ;;  %v6308_v51 = vpop.f32.mrf.mxu1 }
 0x120   : > { %v622_v35 = vadd.f32 %v6308_v51, %v6306_v50  ;;  %v5201_v50 = vld [vmem:[%s7571_s3 + $0x504] sm:$0xf]  ;;  %v4045_v51 = vld [vmem:[%s7571_s3 + $0x508] sm:$0xf0] }
 0x121   : > { %v4048_v18 = vor.u32 %v5201_v50, %v4045_v51 }
 0x122   : > { %v910_v19 = vrot.slane %v622_v35, 7  ;;  %v4292_v35 = vld [vmem:[%s7571_s3 + $0x4f0] sm:$0xf] }
 0x123   : > { %1688 = vmatpush.bf16.msrb.mxu0 %v4048_v18  ;;  %v4293_v18 = vor.u32 %v5200_v11, %v4292_v35  ;;  %v5177_v35 = vld [vmem:[%s7571_s3 + $0x444] sm:$0xf] }
 0x124   : > { %v6340_v3 = vpop.f32.mrf.mxu2  ;;  %v6342_v4 = vpop.f32.mrf.mxu3 }
 0x125   : > { %v594_v20 = vadd.f32 %v6342_v4, %v6340_v3  ;;  %v285_v3 = vadd.s32 8, %v6448_v1 }
 0x127   : > { %v609_v13 = vpop.f32.mrf.mxu0  ;;  %v623_v14 = vpop.f32.mrf.mxu1  ;;  %v909_v26 = vrot.slane %v594_v20, 7  ;;  %v297_v36 = vand.u32 15, %v285_v3  ;;  %v4284_v20 = vld [vmem:[%s7571_s3 + $0x4e0] sm:$0xf] }
 0x128   : > { %v6446_v62 = vadd.f32 %v623_v14, %v609_v13  ;;  %v290_v13 = vand.u32 15, %v6448_v1  ;;  %v4043_v14 = vld [vmem:[%s7571_s3 + $0x500] sm:$0xf] }
 0x129   : > { %v4044_v17 = vor.u32 %v5202_v15, %v4043_v14  ;;  %vm6505_vm5 = vcmp.ne.s32.totalorder %v297_v36, 15  ;;  %v5196_v36 = vld [vmem:[%s7571_s3 + $0x4d4] sm:$0xf0] }
 0x12a   : > { %v912_v12 = vrot.slane %v6446_v62, 7  ;;  %vm6482_vm3 = vcmp.ne.s32.totalorder %v290_v13, 0  ;;  %v4294_v13 = vld [vmem:[%s7571_s3 + $0x4f8] sm:$0xf0] }
 0x12b   : > { %1660 = vmatpush.bf16.msra.mxu2 %v4044_v17 }
 0x12c   : > { %v6392_v29 = vpop.f32.mrf.mxu2  ;;  %v595_v30 = vpop.f32.mrf.mxu3  ;;  %v917_v24 = vsel %vm913_vm2, %v912_v12, %v910_v19  ;;  %v915_v48 = vsel %vm913_vm2, %v910_v19, %v912_v12  ;;  %v5199_v12 = vld [vmem:[%s7571_s3 + $0x4f4] sm:$0xf] }
 0x12d   : > { %v596_v16 = vadd.f32 %v595_v30, %v6392_v29  ;;  %v923_v28 = vsel %vm6482_vm3, %v917_v24, 0.0  ;;  %v4297_v19 = vor.u32 %v5199_v12, %v4294_v13  ;;  %v5197_v24 = vld [vmem:[%s7571_s3 + $0x4e4] sm:$0xf]  ;;  %v4252_v12 = vld [vmem:[%s7571_s3 + $0x4a0] sm:$0xf] }
 0x12e   : > { %v5190_v13 = vld [vmem:[%s7571_s3 + $0x4a4] sm:$0xf0] }
 0x12f   : > { %v6415_v43 = vpop.f32.mrf.mxu0  ;;  %v6417_v44 = vpop.f32.mrf.mxu1  ;;  %v911_v25 = vrot.slane %v596_v16, 7 }
 0x130   : > { %v904_v31 = vadd.f32 %v6417_v44, %v6415_v43 }
 0x131   : > { %v916_v32 = vsel %vm913_vm2, %v911_v25, %v909_v26  ;;  %v914_v2 = vsel %vm913_vm2, %v909_v26, %v911_v25  ;;  %v4286_v25 = vld [vmem:[%s7571_s3 + $0x4e8] sm:$0xf0] }
 0x132   : > { %v922_v40 = vsel %vm6482_vm3, %v916_v32, 0.0  ;;  %v1143_v45 = vrot.slane %v904_v31, 1  ;;  %v4289_v32 = vor.u32 %v5197_v24, %v4286_v25  ;;  %v4244_v24 = vld [vmem:[%s7571_s3 + $0x490] sm:$0xf]  ;;  %v5188_v25 = vld [vmem:[%s7571_s3 + $0x494] sm:$0xf0] }
 0x134   : > { %v861_v63 = vpop.f32.mrf.mxu2  ;;  %v875_v0 = vpop.f32.mrf.mxu3 }
 0x135   : > { %v876_v44 = vadd.f32 %v875_v0, %v861_v63 }
 0x137   : > { %v891_v9 = vpop.f32.mrf.mxu0  ;;  %v905_v10 = vpop.f32.mrf.mxu1  ;;  %v1142_v59 = vrot.slane %v876_v44, 1  ;;  %v4222_v44 = vld [vmem:[%s7571_s3 + $0x468] sm:$0xf0] }
 0x138   : > { %v906_v27 = vadd.f32 %v905_v10, %v891_v9 }
 0x13a   : > { %v1145_v33 = vrot.slane %v906_v27, 1  ;;  %v4228_v27 = vld [vmem:[%s7571_s3 + $0x470] sm:$0xf] }
 0x13c   : > { %v863_v21 = vpop.f32.mrf.mxu2  ;;  %v877_v22 = vpop.f32.mrf.mxu3  ;;  %v1148_v46 = vsel %vm1146_vm4, %v1143_v45, %v1145_v33  ;;  %v1150_v56 = vsel %vm1146_vm4, %v1145_v33, %v1143_v45  ;;  %v4276_v33 = vld [vmem:[%s7571_s3 + $0x4d0] sm:$0xf]  ;;  %v5182_v45 = vld [vmem:[%s7571_s3 + $0x464] sm:$0xf0] }
 0x13d   : > { %v878_v37 = vadd.f32 %v877_v22, %v863_v21  ;;  %v1158_v61 = vsel %vm6505_vm5, %v1150_v56, 0.0  ;;  %v5198_v22 = vld [vmem:[%s7571_s3 + $0x4e4] sm:$0xf0] }
 0x13e   : > { %v4285_v31 = vor.u32 %v5198_v22, %v4284_v20  ;;  %v4253_v20 = vor.u32 %v5190_v13, %v4252_v12  ;;  %v4436_v13 = vld [vmem:[%s7571_s3 + $0x6d0] sm:$0xf] }
 0x13f   : > { %v1144_v53 = vrot.slane %v878_v37, 1  ;;  %v5195_v37 = vld [vmem:[%s7571_s3 + $0x4d4] sm:$0xf] }
 0x140   : > { %v1123_v29 = vpop.f32.mrf.mxu0 }
 0x141   : > { %v1124_v4 = vadd.f32 %v1123_v29, %v923_v28  ;;  %v1147_v63 = vsel %vm1146_vm4, %v1142_v59, %v1144_v53  ;;  %v1149_v34 = vsel %vm1146_vm4, %v1144_v53, %v1142_v59  ;;  %v5184_v28 = vld [vmem:[%s7571_s3 + $0x474] sm:$0xf0]  ;;  %v5183_v29 = vld [vmem:[%s7571_s3 + $0x474] sm:$0xf]  ;;  %v5193_v53 = vld [vmem:[%s7571_s3 + $0x4c4] sm:$0xf] }
 0x142   : > { %v1137_v30 = vpop.f32.mrf.mxu1  ;;  %v1157_v51 = vsel %vm6505_vm5, %v1149_v34, 0.0  ;;  %v5179_v59 = vld [vmem:[%s7571_s3 + $0x454] sm:$0xf]  ;;  %v5178_v34 = vld [vmem:[%s7571_s3 + $0x444] sm:$0xf0] }
 0x143   : > { %v1138_v39 = vadd.f32 %v1137_v30, %v1124_v4  ;;  %v4230_v30 = vld [vmem:[%s7571_s3 + $0x478] sm:$0xf0] }
 0x145   : > { %v1095_v41 = vpop.f32.mrf.mxu2  ;;  %v1109_v42 = vpop.f32.mrf.mxu3  ;;  %v1160_v54 = vadd.f32 %v1148_v46, %v1138_v39  ;;  %v4277_v46 = vor.u32 %v5196_v36, %v4276_v33  ;;  %v4236_v36 = vld [vmem:[%s7571_s3 + $0x480] sm:$0xf] }
 0x146   : > { %v1096_v43 = vadd.f32 %v1095_v41, %v922_v40  ;;  %v4229_v40 = vor.u32 %v5184_v28, %v4228_v27  ;;  %v4233_v41 = vor.u32 %v5183_v29, %v4230_v30  ;;  %v4246_v27 = vld [vmem:[%s7571_s3 + $0x498] sm:$0xf0]  ;;  %v4188_v30 = vld [vmem:[%s7571_s3 + $0x420] sm:$0xf] }
 0x147   : > { %v1169_v62 = vadd.f32 %v1165_v47, %v1160_v54  ;;  %v4270_v54 = vld [vmem:[%s7571_s3 + $0x4c8] sm:$0xf0] }
 0x148   : > { %v1125_v49 = vpop.f32.mrf.mxu0  ;;  %v1110_v57 = vadd.f32 %v1109_v42, %v1096_v43  ;;  %v4220_v42 = vld [vmem:[%s7571_s3 + $0x460] sm:$0xf]  ;;  %v5181_v43 = vld [vmem:[%s7571_s3 + $0x464] sm:$0xf] }
 0x149   : > { %v1126_v55 = vadd.f32 %v1125_v49, %v915_v48  ;;  %v1173_v15 = vmax.f32 %v1169_v62, 0.0  ;;  %v4268_v48 = vld [vmem:[%s7571_s3 + $0x4c0] sm:$0xf]  ;;  %v5194_v49 = vld [vmem:[%s7571_s3 + $0x4c4] sm:$0xf0]  ;;  %v4225_v56 = vor.u32 %v5181_v43, %v4222_v44  ;;  %v4273_v62 = vor.u32 %v5193_v53, %v4270_v54 }
 0x14a   : > { %v1139_v58 = vpop.f32.mrf.mxu1  ;;  %v1159_v6 = vadd.f32 %v1147_v63, %v1110_v57  ;;  %v4212_v57 = vld [vmem:[%s7571_s3 + $0x450] sm:$0xf]  ;;  %v5172_v43 = vld [vmem:[%s7571_s3 + $0x414] sm:$0xf0]  ;;  %v5171_v44 = vld [vmem:[%s7571_s3 + $0x414] sm:$0xf] }
 0x14b   : > { %v1140_v60 = vadd.f32 %v1139_v58, %v1126_v55  ;;  %v4221_v55 = vor.u32 %v5182_v45, %v4220_v42  ;;  %v5180_v58 = vld [vmem:[%s7571_s3 + $0x454] sm:$0xf0]  ;;  %v4260_v63 = vld [vmem:[%s7571_s3 + $0x4b0] sm:$0xf]  ;;  %v4172_v54 = vld [vmem:[%s7571_s3 + $0x400] sm:$0xf] }
 0x14c   : > { %v1168_v16 = vadd.f32 %v1164_v7, %v1159_v6  ;;  %v4213_v6 = vor.u32 %v5180_v58, %v4212_v57  ;;  %v4180_v45 = vld [vmem:[%s7571_s3 + $0x410] sm:$0xf]  ;;  %v4174_v57 = vld [vmem:[%s7571_s3 + $0x408] sm:$0xf0] }
 0x14d   : > { %v1162_v0 = vadd.f32 %v1158_v61, %v1140_v60  ;;  %v1097_v5 = vpop.f32.mrf.mxu2  ;;  %v1111_v10 = vpop.f32.mrf.mxu3  ;;  %v4214_v60 = vld [vmem:[%s7571_s3 + $0x458] sm:$0xf0]  ;;  %v4269_v61 = vor.u32 %v5194_v49, %v4268_v48  ;;  %v4181_v49 = vor.u32 %v5172_v43, %v4180_v45  ;;  %v4364_v43 = vld [vmem:[%s7571_s3 + $0x640] sm:$0xf] }
 0x14e   : > { %v1098_v8 = vadd.f32 %v1097_v5, %v914_v2  ;;  %v1172_v3 = vmax.f32 %v1168_v16, 0.0  ;;  %v5191_v2 = vld [vmem:[%s7571_s3 + $0x4b4] sm:$0xf]  ;;  %v4262_v5 = vld [vmem:[%s7571_s3 + $0x4b8] sm:$0xf0] }
 0x14f   : > { %v1171_v9 = vadd.f32 %v1165_v47, %v1162_v0  ;;  %v4281_v47 = vor.u32 %v5195_v37, %v4278_v38  ;;  %v5192_v0 = vld [vmem:[%s7571_s3 + $0x4b4] sm:$0xf0]  ;;  %v4265_v11 = vor.u32 %v5191_v2, %v4262_v5  ;;  %v4196_v16 = vld [vmem:[%s7571_s3 + $0x430] sm:$0xf]  ;;  %v5186_v37 = vld [vmem:[%s7571_s3 + $0x484] sm:$0xf0] }
 0x150   : > { %v1112_v14 = vadd.f32 %v1111_v10, %v1098_v8  ;;  %v4204_v8 = vld [vmem:[%s7571_s3 + $0x440] sm:$0xf]  ;;  %v4261_v10 = vor.u32 %v5192_v0, %v4260_v63  ;;  %v5185_v38 = vld [vmem:[%s7571_s3 + $0x484] sm:$0xf]  ;;  %v5262_v2 = vld [vmem:[%s7571_s3 + $0x6e4] sm:$0xf0] }
 0x151   : > { %v1175_v50 = vmax.f32 %v1171_v9, 0.0  ;;  %v4206_v9 = vld [vmem:[%s7571_s3 + $0x448] sm:$0xf0]  ;;  %v5261_v5 = vld [vmem:[%s7571_s3 + $0x6e4] sm:$0xf] }
 0x152   : > { %v1161_v17 = vadd.f32 %v1157_v51, %v1112_v14  ;;  %v5189_v14 = vld [vmem:[%s7571_s3 + $0x4a4] sm:$0xf]  ;;  %v4209_v51 = vor.u32 %v5177_v35, %v4206_v9  ;;  %v5248_v35 = vld [vmem:[%s7571_s3 + $0x674] sm:$0xf0]  ;;  %v5247_v9 = vld [vmem:[%s7571_s3 + $0x674] sm:$0xf] }
 0x153   : > { %v6536_v21 = vpack.c.bf16 %v1175_v50, %v1173_v15  ;;  %v4254_v15 = vld [vmem:[%s7571_s3 + $0x4a8] sm:$0xf0]  ;;  %v4205_v50 = vor.u32 %v5178_v34, %v4204_v8  ;;  %v4388_v34 = vld [vmem:[%s7571_s3 + $0x670] sm:$0xf] }
 0x154   : > { %v1170_v26 = vadd.f32 %v1164_v7, %v1161_v17  ;;  %v4217_v7 = vor.u32 %v5179_v59, %v4214_v60  ;;  %v5176_v17 = vld [vmem:[%s7571_s3 + $0x434] sm:$0xf0]  ;;  %v4257_v22 = vor.u32 %v5189_v14, %v4254_v15  ;;  %v4452_v60 = vld [vmem:[%s7571_s3 + $0x6f0] sm:$0xf]  ;;  %v5259_v15 = vld [vmem:[%s7571_s3 + $0x6d4] sm:$0xf] }
 0x155   : > { %1393 = vmatmul.bf16.vlgmr.msrb.gmra.mxu3 %v6536_v21  ;;  %1421 = vmatmul.bf16.vlgmr.msra.gmra.mxu1 %v6536_v21  ;;  %v4197_v28 = vor.u32 %v5176_v17, %v4196_v16  ;;  %v5260_v14 = vld [vmem:[%s7571_s3 + $0x6d4] sm:$0xf0]  ;;  %v4380_v17 = vld [vmem:[%s7571_s3 + $0x660] sm:$0xf] }
 0x156   : > { %v1174_v4 = vmax.f32 %v1170_v26, 0.0  ;;  %1897 = vmatpush.bf16.msrb.mxu3 %v4293_v18  ;;  %1925 = vmatpush.bf16.msra.mxu1 %v4297_v19  ;;  %v5175_v18 = vld [vmem:[%s7571_s3 + $0x434] sm:$0xf]  ;;  %v4198_v19 = vld [vmem:[%s7571_s3 + $0x438] sm:$0xf0] }
 0x157   : > { %v5187_v26 = vld [vmem:[%s7571_s3 + $0x494] sm:$0xf]  ;;  %v4201_v29 = vor.u32 %v5175_v18, %v4198_v19  ;;  %v5246_v18 = vld [vmem:[%s7571_s3 + $0x664] sm:$0xf0]  ;;  %v5245_v19 = vld [vmem:[%s7571_s3 + $0x664] sm:$0xf] }
 0x158   : > { %v6573_v39 = vpack.c.bf16 %v1174_v4, %v1172_v3  ;;  %v5174_v3 = vld [vmem:[%s7571_s3 + $0x424] sm:$0xf0]  ;;  %v5173_v4 = vld [vmem:[%s7571_s3 + $0x424] sm:$0xf]  ;;  %v4249_v33 = vor.u32 %v5187_v26, %v4246_v27 }
 0x159   : > { %v5258_v26 = vld [vmem:[%s7571_s3 + $0x6c4] sm:$0xf0]  ;;  %v5257_v27 = vld [vmem:[%s7571_s3 + $0x6c4] sm:$0xf] }
 0x15a   : > { %1898 = vmatpush.bf16.msrb.mxu3 %v4285_v31  ;;  %1926 = vmatpush.bf16.msra.mxu1 %v4289_v32  ;;  %v4190_v31 = vld [vmem:[%s7571_s3 + $0x428] sm:$0xf0]  ;;  %v4245_v32 = vor.u32 %v5188_v25, %v4244_v24  ;;  %v4428_v25 = vld [vmem:[%s7571_s3 + $0x6c0] sm:$0xf] }
 0x15b   : > { %1379 = vmatmul.bf16.vlgmr.msrb.gmra.mxu2 %v6573_v39  ;;  %1407 = vmatmul.bf16.vlgmr.msra.gmra.mxu0 %v6573_v39  ;;  %v4193_v42 = vor.u32 %v5173_v4, %v4190_v31  ;;  %v5244_v4 = vld [vmem:[%s7571_s3 + $0x654] sm:$0xf0]  ;;  %v5243_v31 = vld [vmem:[%s7571_s3 + $0x654] sm:$0xf] }
 0x15c   : > { %1883 = vmatpush.bf16.msrb.mxu2 %v4229_v40  ;;  %1911 = vmatpush.bf16.msra.mxu0 %v4233_v41  ;;  %v4238_v40 = vld [vmem:[%s7571_s3 + $0x488] sm:$0xf0]  ;;  %v4189_v41 = vor.u32 %v5174_v3, %v4188_v30  ;;  %v4372_v3 = vld [vmem:[%s7571_s3 + $0x650] sm:$0xf] }
 0x15d   : > { %v4241_v48 = vor.u32 %v5185_v38, %v4238_v40  ;;  %v5256_v38 = vld [vmem:[%s7571_s3 + $0x6b4] sm:$0xf0]  ;;  %v5255_v40 = vld [vmem:[%s7571_s3 + $0x6b4] sm:$0xf] }
 0x15e   : > { %1899 = vmatpush.bf16.msrb.mxu3 %v4277_v46  ;;  %1927 = vmatpush.bf16.msra.mxu1 %v4281_v47  ;;  %v4182_v46 = vld [vmem:[%s7571_s3 + $0x418] sm:$0xf0]  ;;  %v4237_v47 = vor.u32 %v5186_v37, %v4236_v36  ;;  %v4420_v37 = vld [vmem:[%s7571_s3 + $0x6b0] sm:$0xf] }
 0x15f   : > { %v4185_v53 = vor.u32 %v5171_v44, %v4182_v46  ;;  %v5242_v44 = vld [vmem:[%s7571_s3 + $0x644] sm:$0xf0]  ;;  %v5241_v46 = vld [vmem:[%s7571_s3 + $0x644] sm:$0xf] }
 0x160   : > { %1884 = vmatpush.bf16.msrb.mxu2 %v4221_v55  ;;  %1912 = vmatpush.bf16.msra.mxu0 %v4225_v56  ;;  %v5170_v55 = vld [vmem:[%s7571_s3 + $0x404] sm:$0xf0]  ;;  %v5169_v56 = vld [vmem:[%s7571_s3 + $0x404] sm:$0xf] }
 0x161   : > { %v4173_v58 = vor.u32 %v5170_v55, %v4172_v54  ;;  %v4177_v59 = vor.u32 %v5169_v56, %v4174_v57  ;;  %v5254_v54 = vld [vmem:[%s7571_s3 + $0x6a4] sm:$0xf0]  ;;  %v5253_v55 = vld [vmem:[%s7571_s3 + $0x6a4] sm:$0xf]  ;;  %v4414_v57 = vld [vmem:[%s7571_s3 + $0x6a8] sm:$0xf0] }
 0x162   : > { %1900 = vmatpush.bf16.msrb.mxu3 %v4269_v61  ;;  %1928 = vmatpush.bf16.msra.mxu1 %v4273_v62  ;;  %v5264_v61 = vld [vmem:[%s7571_s3 + $0x6f4] sm:$0xf0]  ;;  %v5263_v62 = vld [vmem:[%s7571_s3 + $0x6f4] sm:$0xf] }
 0x163   : > { %v4453_v63 = vor.u32 %v5264_v61, %v4452_v60  ;;  %v5240_v60 = vld [vmem:[%s7571_s3 + $0x634] sm:$0xf0]  ;;  %v5239_v61 = vld [vmem:[%s7571_s3 + $0x634] sm:$0xf] }
 0x164   : > { %1885 = vmatpush.bf16.msrb.mxu2 %v4213_v6  ;;  %1913 = vmatpush.bf16.msra.mxu0 %v4217_v7  ;;  %v4446_v7 = vld [vmem:[%s7571_s3 + $0x6e8] sm:$0xf0] }
 0x165   : > { %1675 = vmatmul.bf16.vlgmr.msra.gmra.mxu3 %v6536_v21  ;;  %1703 = vmatmul.bf16.vlgmr.msrb.gmra.mxu1 %v6536_v21  ;;  %v4449_v8 = vor.u32 %v5261_v5, %v4446_v7 }
 0x166   : > { %1901 = vmatpush.bf16.msrb.mxu3 %v4261_v10  ;;  %1929 = vmatpush.bf16.msra.mxu1 %v4265_v11  ;;  %v4389_v10 = vor.u32 %v5248_v35, %v4388_v34  ;;  %v4390_v11 = vld [vmem:[%s7571_s3 + $0x678] sm:$0xf0]  ;;  %v5238_v34 = vld [vmem:[%s7571_s3 + $0x624] sm:$0xf0]  ;;  %v5237_v35 = vld [vmem:[%s7571_s3 + $0x624] sm:$0xf] }
 0x167   : > { %v4393_v12 = vor.u32 %v5247_v9, %v4390_v11 }
 0x168   : > { %1886 = vmatpush.bf16.msrb.mxu2 %v4205_v50  ;;  %1914 = vmatpush.bf16.msra.mxu0 %v4209_v51  ;;  %v4437_v50 = vor.u32 %v5260_v14, %v4436_v13  ;;  %v4438_v51 = vld [vmem:[%s7571_s3 + $0x6d8] sm:$0xf0]  ;;  %v5250_v13 = vld [vmem:[%s7571_s3 + $0x684] sm:$0xf0]  ;;  %v5249_v14 = vld [vmem:[%s7571_s3 + $0x684] sm:$0xf] }
 0x169   : > { %v4441_v16 = vor.u32 %v5259_v15, %v4438_v51  ;;  %v4644_v51 = vld [vmem:[%s7571_s3 + $0x8f0] sm:$0xf] }
 0x16a   : > { %1902 = vmatpush.bf16.msrb.mxu3 %v4253_v20  ;;  %1930 = vmatpush.bf16.msra.mxu1 %v4257_v22  ;;  %v4381_v20 = vor.u32 %v5246_v18, %v4380_v17  ;;  %v4382_v22 = vld [vmem:[%s7571_s3 + $0x668] sm:$0xf0] }
 0x16b   : > { %1661 = vmatmul.bf16.vlgmr.msra.gmra.mxu2 %v6573_v39  ;;  %1689 = vmatmul.bf16.vlgmr.msrb.gmra.mxu0 %v6573_v39  ;;  %v4385_v24 = vor.u32 %v5245_v19, %v4382_v22  ;;  %v5327_v19 = vld [vmem:[%s7571_s3 + $0x8f4] sm:$0xf]  ;;  %v4340_v22 = vld [vmem:[%s7571_s3 + $0x610] sm:$0xf] }
 0x16c   : > { %1887 = vmatpush.bf16.msrb.mxu2 %v4197_v28  ;;  %1915 = vmatpush.bf16.msra.mxu0 %v4201_v29  ;;  %v4429_v28 = vor.u32 %v5258_v26, %v4428_v25  ;;  %v4430_v29 = vld [vmem:[%s7571_s3 + $0x6c8] sm:$0xf0]  ;;  %v5236_v25 = vld [vmem:[%s7571_s3 + $0x614] sm:$0xf0]  ;;  %v5235_v26 = vld [vmem:[%s7571_s3 + $0x614] sm:$0xf] }
 0x16d   : > { %v4433_v30 = vor.u32 %v5257_v27, %v4430_v29  ;;  %v4342_v27 = vld [vmem:[%s7571_s3 + $0x618] sm:$0xf0] }
 0x16e   : > { %1903 = vmatpush.bf16.msrb.mxu3 %v4245_v32  ;;  %1931 = vmatpush.bf16.msra.mxu1 %v4249_v33  ;;  %v4373_v32 = vor.u32 %v5244_v4, %v4372_v3  ;;  %v4374_v33 = vld [vmem:[%s7571_s3 + $0x658] sm:$0xf0]  ;;  %v4345_v29 = vor.u32 %v5235_v26, %v4342_v27  ;;  %v4636_v3 = vld [vmem:[%s7571_s3 + $0x8e0] sm:$0xf]  ;;  %v5326_v4 = vld [vmem:[%s7571_s3 + $0x8e4] sm:$0xf0] }
 0x16f   : > { %v4377_v36 = vor.u32 %v5243_v31, %v4374_v33  ;;  %v5325_v31 = vld [vmem:[%s7571_s3 + $0x8e4] sm:$0xf]  ;;  %v4638_v33 = vld [vmem:[%s7571_s3 + $0x8e8] sm:$0xf0] }
 0x170   : > { %1888 = vmatpush.bf16.msrb.mxu2 %v4189_v41  ;;  %1916 = vmatpush.bf16.msra.mxu0 %v4193_v42  ;;  %v4421_v41 = vor.u32 %v5256_v38, %v4420_v37  ;;  %v4422_v42 = vld [vmem:[%s7571_s3 + $0x6b8] sm:$0xf0]  ;;  %v5234_v37 = vld [vmem:[%s7571_s3 + $0x604] sm:$0xf0]  ;;  %v4641_v38 = vor.u32 %v5325_v31, %v4638_v33  ;;  %v5305_v26 = vld [vmem:[%s7571_s3 + $0x844] sm:$0xf] }
 0x171   : > { %v4425_v45 = vor.u32 %v5255_v40, %v4422_v42  ;;  %v4334_v42 = vld [vmem:[%s7571_s3 + $0x608] sm:$0xf0]  ;;  %v5317_v31 = vld [vmem:[%s7571_s3 + $0x8a4] sm:$0xf] }
 0x172   : > { %1904 = vmatpush.bf16.msrb.mxu3 %v4237_v47  ;;  %1932 = vmatpush.bf16.msra.mxu1 %v4241_v48  ;;  %v4365_v47 = vor.u32 %v5242_v44, %v4364_v43  ;;  %v4366_v48 = vld [vmem:[%s7571_s3 + $0x648] sm:$0xf0]  ;;  %v5312_v44 = vld [vmem:[%s7571_s3 + $0x874] sm:$0xf0] }
 0x173   : > { %v4606_v33 = vld [vmem:[%s7571_s3 + $0x8a8] sm:$0xf0] }
 0x174   : > { %1889 = vmatpush.bf16.msrb.mxu2 %v4181_v49  ;;  %1917 = vmatpush.bf16.msra.mxu0 %v4185_v53  ;;  %v4369_v49 = vor.u32 %v5241_v46, %v4366_v48  ;;  %v4412_v53 = vld [vmem:[%s7571_s3 + $0x6a0] sm:$0xf]  ;;  %v5311_v46 = vld [vmem:[%s7571_s3 + $0x874] sm:$0xf] }
 0x175   : > { %1905 = vmatmul.bf16.vlgmr.msrb.gmra.mxu3 %v6536_v21  ;;  %1933 = vmatmul.bf16.vlgmr.msra.gmra.mxu1 %v6536_v21  ;;  %v4454_v21 = vld [vmem:[%s7571_s3 + $0x6f8] sm:$0xf0]  ;;  %v4413_v56 = vor.u32 %v5254_v54, %v4412_v53  ;;  %v4628_v53 = vld [vmem:[%s7571_s3 + $0x8d0] sm:$0xf]  ;;  %v5324_v54 = vld [vmem:[%s7571_s3 + $0x8d4] sm:$0xf0] }
 0x176   : > { %v4457_v0 = vor.u32 %v5263_v62, %v4454_v21  ;;  %2177 = vmatpush.bf16.msra.mxu3 %v4453_v63  ;;  %v4358_v63 = vld [vmem:[%s7571_s3 + $0x638] sm:$0xf0] }
 0x177   : > { %v4361_v21 = vor.u32 %v5239_v61, %v4358_v63  ;;  %v4572_v61 = vld [vmem:[%s7571_s3 + $0x860] sm:$0xf]  ;;  %v5309_v63 = vld [vmem:[%s7571_s3 + $0x864] sm:$0xf] }
 0x178   : > { %1890 = vmatpush.bf16.msrb.mxu2 %v4173_v58  ;;  %1918 = vmatpush.bf16.msra.mxu0 %v4177_v59  ;;  %v4417_v58 = vor.u32 %v5253_v55, %v4414_v57  ;;  %v4356_v59 = vld [vmem:[%s7571_s3 + $0x630] sm:$0xf]  ;;  %v5323_v55 = vld [vmem:[%s7571_s3 + $0x8d4] sm:$0xf]  ;;  %v4630_v57 = vld [vmem:[%s7571_s3 + $0x8d8] sm:$0xf0] }
 0x179   : > { %2205 = vmatpush.bf16.msrb.mxu1 %v4457_v0  ;;  %v4357_v62 = vor.u32 %v5240_v60, %v4356_v59  ;;  %v4404_v0 = vld [vmem:[%s7571_s3 + $0x690] sm:$0xf]  ;;  %v4633_v60 = vor.u32 %v5323_v55, %v4630_v57  ;;  %v5302_v57 = vld [vmem:[%s7571_s3 + $0x824] sm:$0xf0] }
 0x17b   : > { %1891 = vmatmul.bf16.vlgmr.msrb.gmra.mxu2 %v6573_v39  ;;  %1919 = vmatmul.bf16.vlgmr.msra.gmra.mxu0 %v6573_v39  ;;  %v4444_v39 = vld [vmem:[%s7571_s3 + $0x6e0] sm:$0xf] }
 0x17c   : > { %v4445_v6 = vor.u32 %v5262_v2, %v4444_v39  ;;  %2163 = vmatpush.bf16.msra.mxu2 %v4389_v10  ;;  %2191 = vmatpush.bf16.msrb.mxu0 %v4393_v12  ;;  %v5252_v39 = vld [vmem:[%s7571_s3 + $0x694] sm:$0xf0]  ;;  %v5251_v2 = vld [vmem:[%s7571_s3 + $0x694] sm:$0xf]  ;;  %v4350_v10 = vld [vmem:[%s7571_s3 + $0x628] sm:$0xf0] }
 0x17d   : > { %2206 = vmatpush.bf16.msrb.mxu1 %v4449_v8  ;;  %v4405_v5 = vor.u32 %v5252_v39, %v4404_v0  ;;  %v4348_v8 = vld [vmem:[%s7571_s3 + $0x620] sm:$0xf]  ;;  %v4353_v11 = vor.u32 %v5237_v35, %v4350_v10  ;;  %v4574_v0 = vld [vmem:[%s7571_s3 + $0x868] sm:$0xf0]  ;;  %v5308_v10 = vld [vmem:[%s7571_s3 + $0x854] sm:$0xf0] }
 0x17e   : > { %2178 = vmatpush.bf16.msra.mxu3 %v4445_v6  ;;  %v4406_v6 = vld [vmem:[%s7571_s3 + $0x698] sm:$0xf0]  ;;  %v4349_v9 = vor.u32 %v5238_v34, %v4348_v8  ;;  %v4396_v12 = vld [vmem:[%s7571_s3 + $0x680] sm:$0xf]  ;;  %v4622_v34 = vld [vmem:[%s7571_s3 + $0x8c8] sm:$0xf0] }
 0x17f   : > { %v4409_v7 = vor.u32 %v5251_v2, %v4406_v6  ;;  %v4397_v15 = vor.u32 %v5250_v13, %v4396_v12  ;;  %v4577_v2 = vor.u32 %v5309_v63, %v4574_v0  ;;  %v5322_v6 = vld [vmem:[%s7571_s3 + $0x8c4] sm:$0xf0]  ;;  %v4566_v13 = vld [vmem:[%s7571_s3 + $0x858] sm:$0xf0]  ;;  %v4588_v0 = vld [vmem:[%s7571_s3 + $0x880] sm:$0xf] }
 0x180   : > { %2164 = vmatpush.bf16.msra.mxu2 %v4381_v20  ;;  %2192 = vmatpush.bf16.msrb.mxu0 %v4385_v24  ;;  %v4646_v20 = vld [vmem:[%s7571_s3 + $0x8f8] sm:$0xf0] }
 0x181   : > { %2207 = vmatpush.bf16.msrb.mxu1 %v4441_v16  ;;  %v5328_v16 = vld [vmem:[%s7571_s3 + $0x8f4] sm:$0xf0]  ;;  %v4649_v24 = vor.u32 %v5327_v19, %v4646_v20 }
 0x182   : > { %2179 = vmatpush.bf16.msra.mxu3 %v4437_v50  ;;  %v4398_v50 = vld [vmem:[%s7571_s3 + $0x688] sm:$0xf0]  ;;  %v4645_v18 = vor.u32 %v5328_v16, %v4644_v51  ;;  %v5320_v51 = vld [vmem:[%s7571_s3 + $0x8b4] sm:$0xf0]  ;;  %v5319_v16 = vld [vmem:[%s7571_s3 + $0x8b4] sm:$0xf] }
 0x183   : > { %v4401_v17 = vor.u32 %v5249_v14, %v4398_v50  ;;  %v4612_v50 = vld [vmem:[%s7571_s3 + $0x8b0] sm:$0xf] }
 0x184   : > { %2165 = vmatpush.bf16.msra.mxu2 %v4373_v32  ;;  %2193 = vmatpush.bf16.msrb.mxu0 %v4377_v36  ;;  %v4637_v32 = vor.u32 %v5326_v4, %v4636_v3  ;;  %v4332_v36 = vld [vmem:[%s7571_s3 + $0x600] sm:$0xf]  ;;  %v5318_v4 = vld [vmem:[%s7571_s3 + $0x8a4] sm:$0xf0] }
 0x185   : > { %2208 = vmatpush.bf16.msrb.mxu1 %v4433_v30  ;;  %v4333_v40 = vor.u32 %v5234_v37, %v4332_v36  ;;  %v4604_v3 = vld [vmem:[%s7571_s3 + $0x8a0] sm:$0xf]  ;;  %v4609_v37 = vor.u32 %v5317_v31, %v4606_v33 }
 0x186   : > { %2180 = vmatpush.bf16.msra.mxu3 %v4429_v28  ;;  %v4341_v28 = vor.u32 %v5236_v25, %v4340_v22  ;;  %v5306_v25 = vld [vmem:[%s7571_s3 + $0x844] sm:$0xf0] }
 0x188   : > { %2166 = vmatpush.bf16.msra.mxu2 %v4365_v47  ;;  %2194 = vmatpush.bf16.msrb.mxu0 %v4369_v49  ;;  %v4582_v47 = vld [vmem:[%s7571_s3 + $0x878] sm:$0xf0] }
 0x189   : > { %2209 = vmatpush.bf16.msrb.mxu1 %v4425_v45  ;;  %v4580_v45 = vld [vmem:[%s7571_s3 + $0x870] sm:$0xf]  ;;  %v4585_v49 = vor.u32 %v5311_v46, %v4582_v47  ;;  %v5316_v47 = vld [vmem:[%s7571_s3 + $0x894] sm:$0xf0] }
 0x18a   : > { %2181 = vmatpush.bf16.msra.mxu3 %v4421_v41  ;;  %v5233_v41 = vld [vmem:[%s7571_s3 + $0x604] sm:$0xf]  ;;  %v4581_v48 = vor.u32 %v5312_v44, %v4580_v45  ;;  %v4550_v45 = vld [vmem:[%s7571_s3 + $0x838] sm:$0xf0]  ;;  %v4596_v46 = vld [vmem:[%s7571_s3 + $0x890] sm:$0xf] }
 0x18b   : > { %v4337_v43 = vor.u32 %v5233_v41, %v4334_v42  ;;  %v5303_v41 = vld [vmem:[%s7571_s3 + $0x834] sm:$0xf] }
 0x18c   : > { %2167 = vmatpush.bf16.msra.mxu2 %v4357_v62  ;;  %2195 = vmatpush.bf16.msrb.mxu0 %v4361_v21  ;;  %v5310_v62 = vld [vmem:[%s7571_s3 + $0x864] sm:$0xf0]  ;;  %v4553_v44 = vor.u32 %v5303_v41, %v4550_v45 }
 0x18d   : > { %2210 = vmatpush.bf16.msrb.mxu1 %v4417_v58  ;;  %v4573_v21 = vor.u32 %v5310_v62, %v4572_v61  ;;  %v4542_v62 = vld [vmem:[%s7571_s3 + $0x828] sm:$0xf0] }
 0x18e   : > { %2182 = vmatpush.bf16.msra.mxu3 %v4413_v56  ;;  %v4629_v56 = vor.u32 %v5324_v54, %v4628_v53  ;;  %v4598_v53 = vld [vmem:[%s7571_s3 + $0x898] sm:$0xf0] }
 0x190   : > { %2168 = vmatpush.bf16.msra.mxu2 %v4349_v9  ;;  %2196 = vmatpush.bf16.msrb.mxu0 %v4353_v11  ;;  %v4564_v9 = vld [vmem:[%s7571_s3 + $0x850] sm:$0xf]  ;;  %v5307_v11 = vld [vmem:[%s7571_s3 + $0x854] sm:$0xf] }
 0x191   : > { %2211 = vmatpush.bf16.msrb.mxu1 %v4409_v7  ;;  %v5321_v7 = vld [vmem:[%s7571_s3 + $0x8c4] sm:$0xf]  ;;  %v4565_v12 = vor.u32 %v5308_v10, %v4564_v9  ;;  %v5300_v9 = vld [vmem:[%s7571_s3 + $0x814] sm:$0xf0] }
 0x192   : > { %2183 = vmatpush.bf16.msra.mxu3 %v4405_v5  ;;  %v4620_v5 = vld [vmem:[%s7571_s3 + $0x8c0] sm:$0xf]  ;;  %v4625_v35 = vor.u32 %v5321_v7, %v4622_v34  ;;  %v4590_v7 = vld [vmem:[%s7571_s3 + $0x888] sm:$0xf0] }
 0x193   : > { %v4621_v8 = vor.u32 %v5322_v6, %v4620_v5  ;;  %v5313_v5 = vld [vmem:[%s7571_s3 + $0x884] sm:$0xf] }
 0x194   : > { %2169 = vmatpush.bf16.msra.mxu2 %v4341_v28  ;;  %2197 = vmatpush.bf16.msrb.mxu0 %v4345_v29  ;;  %v4558_v28 = vld [vmem:[%s7571_s3 + $0x848] sm:$0xf0] }
 0x195   : > { %2212 = vmatpush.bf16.msrb.mxu1 %v4401_v17  ;;  %v4613_v17 = vor.u32 %v5320_v51, %v4612_v50  ;;  %v4561_v29 = vor.u32 %v5305_v26, %v4558_v28 }
 0x196   : > { %2184 = vmatpush.bf16.msra.mxu3 %v4397_v15  ;;  %v4569_v15 = vor.u32 %v5307_v11, %v4566_v13  ;;  %v5299_v13 = vld [vmem:[%s7571_s3 + $0x814] sm:$0xf] }
 0x198   : > { %2170 = vmatpush.bf16.msra.mxu2 %v4333_v40  ;;  %2198 = vmatpush.bf16.msrb.mxu0 %v4337_v43  ;;  %v5304_v40 = vld [vmem:[%s7571_s3 + $0x834] sm:$0xf0] }
 0x199   : > { %2487 = vmatpush.bf16.msra.mxu1 %v4649_v24  ;;  %v4556_v24 = vld [vmem:[%s7571_s3 + $0x840] sm:$0xf] }
 0x19a   : > { %2459 = vmatpush.bf16.msrb.mxu3 %v4645_v18  ;;  %v4614_v18 = vld [vmem:[%s7571_s3 + $0x8b8] sm:$0xf0]  ;;  %v4557_v27 = vor.u32 %v5306_v25, %v4556_v24 }
 0x19b   : > { %v4617_v22 = vor.u32 %v5319_v16, %v4614_v18  ;;  %v4524_v16 = vld [vmem:[%s7571_s3 + $0x800] sm:$0xf] }
 0x19c   : > { %2445 = vmatpush.bf16.msrb.mxu2 %v4581_v48  ;;  %2473 = vmatpush.bf16.msra.mxu0 %v4585_v49  ;;  %v4597_v48 = vor.u32 %v5316_v47, %v4596_v46  ;;  %v5315_v49 = vld [vmem:[%s7571_s3 + $0x894] sm:$0xf] }
 0x19d   : > { %2488 = vmatpush.bf16.msra.mxu1 %v4641_v38  ;;  %v4548_v38 = vld [vmem:[%s7571_s3 + $0x830] sm:$0xf]  ;;  %v4601_v55 = vor.u32 %v5315_v49, %v4598_v53 }
 0x19e   : > { %2460 = vmatpush.bf16.msrb.mxu3 %v4637_v32  ;;  %v4605_v32 = vor.u32 %v5318_v4, %v4604_v3  ;;  %v4549_v42 = vor.u32 %v5304_v40, %v4548_v38 }
 0x1a0   : > { %2446 = vmatpush.bf16.msrb.mxu2 %v4573_v21  ;;  %2474 = vmatpush.bf16.msra.mxu0 %v4577_v2  ;;  %v5314_v2 = vld [vmem:[%s7571_s3 + $0x884] sm:$0xf0] }
 0x1a1   : > { %2489 = vmatpush.bf16.msra.mxu1 %v4633_v60  ;;  %v5301_v60 = vld [vmem:[%s7571_s3 + $0x824] sm:$0xf]  ;;  %v4589_v6 = vor.u32 %v5314_v2, %v4588_v0 }
 0x1a2   : > { %2461 = vmatpush.bf16.msrb.mxu3 %v4629_v56  ;;  %v4540_v56 = vld [vmem:[%s7571_s3 + $0x820] sm:$0xf]  ;;  %v4545_v21 = vor.u32 %v5301_v60, %v4542_v62 }
 0x1a3   : > { %v4541_v61 = vor.u32 %v5302_v57, %v4540_v56 }
 0x1a4   : > { %2447 = vmatpush.bf16.msrb.mxu2 %v4565_v12  ;;  %2475 = vmatpush.bf16.msra.mxu0 %v4569_v15 }
 0x1a5   : > { %2490 = vmatpush.bf16.msra.mxu1 %v4625_v35  ;;  %v4532_v35 = vld [vmem:[%s7571_s3 + $0x810] sm:$0xf] }
 0x1a6   : > { %2462 = vmatpush.bf16.msrb.mxu3 %v4621_v8  ;;  %v4593_v8 = vor.u32 %v5313_v5, %v4590_v7  ;;  %v4533_v12 = vor.u32 %v5300_v9, %v4532_v35  ;;  %v4773_v35 = vld [vmem:[%s7571_s3 + $0x7f0] sm:$0xf] }
 0x1a8   : > { %2448 = vmatpush.bf16.msrb.mxu2 %v4557_v27  ;;  %2476 = vmatpush.bf16.msra.mxu0 %v4561_v29 }
 0x1a9   : > { %2491 = vmatpush.bf16.msra.mxu1 %v4617_v22  ;;  %v5297_v22 = vld [vmem:[%s7571_s3 + $0x804] sm:$0xf] }
 0x1aa   : > { %2463 = vmatpush.bf16.msrb.mxu3 %v4613_v17  ;;  %v5298_v17 = vld [vmem:[%s7571_s3 + $0x804] sm:$0xf0] }
 0x1ac   : > { %2449 = vmatpush.bf16.msrb.mxu2 %v4549_v42  ;;  %2477 = vmatpush.bf16.msra.mxu0 %v4553_v44 }
 0x1ad   : > { %2492 = vmatpush.bf16.msra.mxu1 %v4609_v37 }
 0x1ae   : > { %2464 = vmatpush.bf16.msrb.mxu3 %v4605_v32 }
 0x1b0   : > { %2450 = vmatpush.bf16.msrb.mxu2 %v4541_v61  ;;  %2478 = vmatpush.bf16.msra.mxu0 %v4545_v21 }
 0x1b1   : > { %2493 = vmatpush.bf16.msra.mxu1 %v4601_v55 }
 0x1b2   : > { %2465 = vmatpush.bf16.msrb.mxu3 %v4597_v48 }
 0x1b4   : > { %2451 = vmatpush.bf16.msrb.mxu2 %v4533_v12 }
 0x1b5   : > { %2494 = vmatpush.bf16.msra.mxu1 %v4593_v8 }
 0x1b6   : > { %2466 = vmatpush.bf16.msrb.mxu3 %v4589_v6 }
 0x1d2   : > { %v6921_v30 = vpop.f32.mrf.mxu1 }
 0x1d8   : > { %v6971_v58 = vpop.f32.mrf.mxu3  ;;  %v6973_v59 = vpop.f32.mrf.mxu0 }
 0x1d9   : > { %v1423_v15 = vadd.f32 %v6921_v30, %v6973_v59  ;;  %v4526_v30 = vld [vmem:[%s7571_s3 + $0x808] sm:$0xf0] }
 0x1da   : > { %v6987_v39 = vpop.f32.mrf.mxu1  ;;  %v4529_v59 = vor.u32 %v5297_v22, %v4526_v30  ;;  %v4765_v30 = vld [vmem:[%s7571_s3 + $0x7e0] sm:$0xf] }
 0x1db   : > { %v1712_v24 = vrot.slane %v1423_v15, 7  ;;  %v4775_v15 = vld [vmem:[%s7571_s3 + $0x7f8] sm:$0xf0] }
 0x1de   : > { %v7013_v14 = vpop.f32.mrf.mxu2 }
 0x1df   : > { %v1395_v27 = vadd.f32 %v6971_v58, %v7013_v14 }
 0x1e0   : > { %v7027_v19 = vpop.f32.mrf.mxu3  ;;  %v1410_v20 = vpop.f32.mrf.mxu0 }
 0x1e1   : > { %v1425_v34 = vadd.f32 %v6987_v39, %v1410_v20  ;;  %v4534_v39 = vld [vmem:[%s7571_s3 + $0x818] sm:$0xf0]  ;;  %v4525_v20 = vor.u32 %v5298_v17, %v4524_v16  ;;  %v1711_v37 = vrot.slane %v1395_v27, 7  ;;  %v5293_v27 = vld [vmem:[%s7571_s3 + $0x7e4] sm:$0xf] }
 0x1e2   : > { %v7053_v36 = vpop.f32.mrf.mxu1  ;;  %v4537_v50 = vor.u32 %v5299_v13, %v4534_v39  ;;  %v5296_v13 = vld [vmem:[%s7571_s3 + $0x7f4] sm:$0xf0]  ;;  %v5295_v39 = vld [vmem:[%s7571_s3 + $0x7f4] sm:$0xf] }
 0x1e3   : > { %v1714_v18 = vrot.slane %v1425_v34, 7  ;;  %2452 = vmatpush.bf16.msrb.mxu2 %v4525_v20  ;;  %v4774_v20 = vor.u32 %v5296_v13, %v4773_v35  ;;  %v4778_v22 = vor.u32 %v5295_v39, %v4775_v15  ;;  %v4733_v15 = vld [vmem:[%s7571_s3 + $0x7a0] sm:$0xf] }
 0x1e4   : > { %2479 = vmatpush.bf16.msra.mxu0 %v4537_v50 }
 0x1e5   : > { %v1718_v28 = vsel %vm913_vm2, %v1714_v18, %v1712_v24  ;;  %v1716_v49 = vsel %vm913_vm2, %v1712_v24, %v1714_v18 }
 0x1e6   : > { %v1382_v43 = vpop.f32.mrf.mxu2  ;;  %v1720_v32 = vsel %vm6482_vm3, %v1718_v28, 0.0  ;;  %v4767_v28 = vld [vmem:[%s7571_s3 + $0x7e8] sm:$0xf0] }
 0x1e7   : > { %v1397_v25 = vadd.f32 %v7027_v19, %v1382_v43  ;;  %v4169_v43 = vld [vmem:[%s7572_s4 + $0x1] ss:$4 sm:$0x3] }
 0x1e8   : > { %v1690_v54 = vpop.f32.mrf.mxu0  ;;  %v1676_v63 = vpop.f32.mrf.mxu3  ;;  %2480 = vmatpush.bf16.msra.mxu0 %v4529_v59  ;;  %v1957_v56 = vperm.slane %v4169_v43, 1  ;;  %v1956_v7 = vperm.slane %v4169_v43, 0  ;;  %v4701_v43 = vld [vmem:[%s7571_s3 + $0x760] sm:$0xf] }
 0x1e9   : > { %v1713_v3 = vrot.slane %v1397_v25, 7  ;;  %v1705_v19 = vadd.f32 %v7053_v36, %v1690_v54 }
 0x1ea   : > { %v1706_v10 = vpop.f32.mrf.mxu1 }
 0x1eb   : > { %v1717_v40 = vsel %vm913_vm2, %v1713_v3, %v1711_v37  ;;  %v1940_v41 = vrot.slane %v1705_v19, 1  ;;  %v1715_v8 = vsel %vm913_vm2, %v1711_v37, %v1713_v3  ;;  %v4770_v37 = vor.u32 %v5293_v27, %v4767_v28  ;;  %v5292_v19 = vld [vmem:[%s7571_s3 + $0x7d4] sm:$0xf0]  ;;  %v4725_v27 = vld [vmem:[%s7571_s3 + $0x790] sm:$0xf] }
 0x1ec   : > { %v1719_v44 = vsel %vm6482_vm3, %v1717_v40, 0.0  ;;  %v5284_v28 = vld [vmem:[%s7571_s3 + $0x794] sm:$0xf0] }
 0x1ee   : > { %v1662_v11 = vpop.f32.mrf.mxu2 }
 0x1ef   : > { %v1677_v48 = vadd.f32 %v1676_v63, %v1662_v11 }
 0x1f0   : > { %v1692_v51 = vpop.f32.mrf.mxu0  ;;  %v1678_v26 = vpop.f32.mrf.mxu3 }
 0x1f1   : > { %v1707_v4 = vadd.f32 %v1706_v10, %v1692_v51  ;;  %v1939_v0 = vrot.slane %v1677_v48, 1  ;;  %v4703_v48 = vld [vmem:[%s7571_s3 + $0x768] sm:$0xf0] }
 0x1f2   : > { %v1934_v31 = vpop.f32.mrf.mxu1 }
 0x1f3   : > { %v1942_v58 = vrot.slane %v1707_v4, 1  ;;  %v5280_v4 = vld [vmem:[%s7571_s3 + $0x774] sm:$0xf0] }
 0x1f5   : > { %v1944_v36 = vsel %vm1146_vm4, %v1940_v41, %v1942_v58  ;;  %v1946_v54 = vsel %vm1146_vm4, %v1942_v58, %v1940_v41  ;;  %v4759_v41 = vld [vmem:[%s7571_s3 + $0x7d8] sm:$0xf0] }
 0x1f6   : > { %v1664_v29 = vpop.f32.mrf.mxu2  ;;  %v1950_v63 = vsel %vm6505_vm5, %v1946_v54, 0.0  ;;  %v5290_v54 = vld [vmem:[%s7571_s3 + $0x7c4] sm:$0xf0] }
 0x1f7   : > { %v1679_v42 = vadd.f32 %v1678_v26, %v1664_v29  ;;  %v5294_v26 = vld [vmem:[%s7571_s3 + $0x7e4] sm:$0xf0]  ;;  %v4709_v29 = vld [vmem:[%s7571_s3 + $0x770] sm:$0xf] }
 0x1f8   : > { %v1920_v33 = vpop.f32.mrf.mxu0  ;;  %v1906_v45 = vpop.f32.mrf.mxu3 }
 0x1f9   : > { %v1921_v38 = vadd.f32 %v1920_v33, %v1720_v32  ;;  %v1941_v60 = vrot.slane %v1679_v42, 1  ;;  %v4711_v32 = vld [vmem:[%s7571_s3 + $0x778] sm:$0xf0]  ;;  %v4766_v33 = vor.u32 %v5294_v26, %v4765_v30  ;;  %v4710_v42 = vor.u32 %v5280_v4, %v4709_v29  ;;  %v5271_v30 = vld [vmem:[%s7571_s3 + $0x734] sm:$0xf] }
 0x1fa   : > { %v1936_v61 = vpop.f32.mrf.mxu1  ;;  %v5283_v29 = vld [vmem:[%s7571_s3 + $0x794] sm:$0xf] }
 0x1fb   : > { %v1935_v14 = vadd.f32 %v1934_v31, %v1921_v38  ;;  %v1943_v6 = vsel %vm1146_vm4, %v1939_v0, %v1941_v60  ;;  %v1945_v9 = vsel %vm1146_vm4, %v1941_v60, %v1939_v0  ;;  %v5279_v31 = vld [vmem:[%s7571_s3 + $0x774] sm:$0xf]  ;;  %v4757_v38 = vld [vmem:[%s7571_s3 + $0x7d0] sm:$0xf]  ;;  %v4695_v0 = vld [vmem:[%s7571_s3 + $0x758] sm:$0xf0] }
 0x1fc   : > { %v1949_v18 = vsel %vm6505_vm5, %v1945_v9, 0.0  ;;  %v4685_v9 = vld [vmem:[%s7571_s3 + $0x740] sm:$0xf] }
 0x1fd   : > { %v1952_v55 = vadd.f32 %v1944_v36, %v1935_v14  ;;  %v5291_v14 = vld [vmem:[%s7571_s3 + $0x7d4] sm:$0xf]  ;;  %v4758_v36 = vor.u32 %v5292_v19, %v4757_v38  ;;  %v4671_v38 = vld [vmem:[%s7571_s3 + $0x728] sm:$0xf0]  ;;  %v4726_v19 = vor.u32 %v5284_v28, %v4725_v27  ;;  %v5365_v27 = vld [vmem:[%s7573_s5 + $0x120] sm:$0xff] }
 0x1fe   : > { %v1892_v46 = vpop.f32.mrf.mxu2 }
 0x1ff   : > { %v1893_v47 = vadd.f32 %v1892_v46, %v1719_v44  ;;  %v1961_v2 = vadd.f32 %v1957_v56, %v1952_v55  ;;  %v5278_v46 = vld [vmem:[%s7571_s3 + $0x764] sm:$0xf0]  ;;  %v5289_v55 = vld [vmem:[%s7571_s3 + $0x7c4] sm:$0xf] }
 0x200   : > { %v1922_v53 = vpop.f32.mrf.mxu0  ;;  %v1908_v50 = vpop.f32.mrf.mxu3 }
 0x201   : > { %v1923_v57 = vadd.f32 %v1922_v53, %v1716_v49  ;;  %v1907_v62 = vadd.f32 %v1906_v45, %v1893_v47  ;;  %v1965_v51 = vmax.f32 %v1961_v2, 0.0  ;;  %v4714_v45 = vor.u32 %v5279_v31, %v4711_v32  ;;  %v5277_v47 = vld [vmem:[%s7571_s3 + $0x764] sm:$0xf]  ;;  %v4749_v53 = vld [vmem:[%s7571_s3 + $0x7c0] sm:$0xf] }
 0x202   : > { %v4762_v49 = vor.u32 %v5291_v14, %v4759_v41  ;;  %v4706_v60 = vor.u32 %v5277_v47, %v4703_v48  ;;  %v4669_v32 = vld [vmem:[%s7571_s3 + $0x720] sm:$0xf]  ;;  %v5282_v14 = vld [vmem:[%s7571_s3 + $0x784] sm:$0xf0]  ;;  %v5281_v41 = vld [vmem:[%s7571_s3 + $0x784] sm:$0xf] }
 0x203   : > { %v1937_v21 = vadd.f32 %v1936_v61, %v1923_v57  ;;  %v1951_v10 = vadd.f32 %v1943_v6, %v1907_v62  ;;  %v4702_v57 = vor.u32 %v5278_v46, %v4701_v43  ;;  %v4693_v61 = vld [vmem:[%s7571_s3 + $0x750] sm:$0xf]  ;;  %v5276_v62 = vld [vmem:[%s7571_s3 + $0x754] sm:$0xf0]  ;;  %v5267_v48 = vld [vmem:[%s7571_s3 + $0x714] sm:$0xf] }
 0x204   : > { %v5288_v6 = vld [vmem:[%s7571_s3 + $0x7b4] sm:$0xf0]  ;;  %v4661_v46 = vld [vmem:[%s7571_s3 + $0x710] sm:$0xf] }
 0x205   : > { %v1954_v5 = vadd.f32 %v1950_v63, %v1937_v21  ;;  %v1960_v59 = vadd.f32 %v1956_v7, %v1951_v10  ;;  %v5275_v21 = vld [vmem:[%s7571_s3 + $0x754] sm:$0xf]  ;;  %v4750_v63 = vor.u32 %v5290_v54, %v4749_v53  ;;  %v5274_v10 = vld [vmem:[%s7571_s3 + $0x744] sm:$0xf0]  ;;  %v5268_v47 = vld [vmem:[%s7571_s3 + $0x714] sm:$0xf0] }
 0x206   : > { %v1894_v34 = vpop.f32.mrf.mxu2  ;;  %v4698_v35 = vor.u32 %v5275_v21, %v4695_v0  ;;  %v4662_v54 = vor.u32 %v5268_v47, %v4661_v46  ;;  %v5344_v0 = vld [vmem:[%s7573_s5 + $0x78] sm:$0xff]  ;;  %v5362_v46 = vld [vmem:[%s7573_s5 + $0x108] sm:$0xff] }
 0x207   : > { %v1963_v11 = vadd.f32 %v1957_v56, %v1954_v5  ;;  %v1895_v12 = vadd.f32 %v1894_v34, %v1715_v8  ;;  %v1964_v40 = vmax.f32 %v1960_v59, 0.0  ;;  %v4751_v56 = vld [vmem:[%s7571_s3 + $0x7c8] sm:$0xf0]  ;;  %v4741_v5 = vld [vmem:[%s7571_s3 + $0x7b0] sm:$0xf]  ;;  %v4694_v34 = vor.u32 %v5276_v62, %v4693_v61 }
 0x208   : > { %v4754_v2 = vor.u32 %v5289_v55, %v4751_v56  ;;  %v4743_v8 = vld [vmem:[%s7571_s3 + $0x7b8] sm:$0xf0]  ;;  %v4742_v13 = vor.u32 %v5288_v6, %v4741_v5  ;;  %v4653_v56 = vld [vmem:[%s7571_s3 + $0x700] sm:$0xf]  ;;  %v4655_v61 = vld [vmem:[%s7571_s3 + $0x708] sm:$0xf0] }
 0x209   : > { %v1967_v16 = vmax.f32 %v1963_v11, 0.0  ;;  %v1909_v17 = vadd.f32 %v1908_v50, %v1895_v12  ;;  %v5273_v11 = vld [vmem:[%s7571_s3 + $0x744] sm:$0xf]  ;;  %v4687_v12 = vld [vmem:[%s7571_s3 + $0x748] sm:$0xf0]  ;;  %v5376_v6 = vld [vmem:[%s7573_s5 + $0x178] sm:$0xff] }
 0x20a   : > { %v5286_v50 = vld [vmem:[%s7571_s3 + $0x7a4] sm:$0xf0]  ;;  %v4679_v59 = vld [vmem:[%s7571_s3 + $0x738] sm:$0xf0]  ;;  %v5341_v5 = vld [vmem:[%s7573_s5 + $0x60] sm:$0xff] }
 0x20b   : > { %v7176_v24 = vpack.c.bf16 %v1967_v16, %v1965_v51  ;;  %v1953_v25 = vadd.f32 %v1949_v18, %v1909_v17  ;;  %v5285_v51 = vld [vmem:[%s7571_s3 + $0x7a4] sm:$0xf]  ;;  %v4735_v16 = vld [vmem:[%s7571_s3 + $0x7a8] sm:$0xf0]  ;;  %v4686_v17 = vor.u32 %v5274_v10, %v4685_v9  ;;  %v4690_v18 = vor.u32 %v5273_v11, %v4687_v12  ;;  %v5368_v10 = vld [vmem:[%s7573_s5 + $0x138] sm:$0xff] }
 0x20c   : > { %v4738_v26 = vor.u32 %v5285_v51, %v4735_v16  ;;  %v4682_v31 = vor.u32 %v5271_v30, %v4679_v59  ;;  %v5339_v11 = vld [vmem:[%s7573_s5 + $0x50] sm:$0xff]  ;;  %v5374_v12 = vld [vmem:[%s7573_s5 + $0x168] sm:$0xff]  ;;  %v5373_v16 = vld [vmem:[%s7573_s5 + $0x160] sm:$0xff] }
 0x20d   : > { %v1962_v3 = vadd.f32 %v1956_v7, %v1953_v25  ;;  %2185 = vmatmul.bf16.vlgmr.msra.gmra.mxu3 %v7176_v24  ;;  %2213 = vmatmul.bf16.vlgmr.msrb.gmra.mxu1 %v7176_v24  ;;  %v5287_v7 = vld [vmem:[%s7571_s3 + $0x7b4] sm:$0xf]  ;;  %v4734_v25 = vor.u32 %v5286_v50, %v4733_v15  ;;  %v5338_v15 = vld [vmem:[%s7573_s5 + $0x48] sm:$0xff]  ;;  %v5372_v30 = vld [vmem:[%s7573_s5 + $0x158] sm:$0xff] }
 0x20e   : > { %2689 = vmatpush.bf16.msra.mxu3 %v4774_v20  ;;  %2717 = vmatpush.bf16.msrb.mxu1 %v4778_v22  ;;  %v4746_v39 = vor.u32 %v5287_v7, %v4743_v8  ;;  %v4677_v20 = vld [vmem:[%s7571_s3 + $0x730] sm:$0xf]  ;;  %v5272_v22 = vld [vmem:[%s7571_s3 + $0x734] sm:$0xf0]  ;;  %v5334_v7 = vld [vmem:[%s7573_s5 + $0x28] sm:$0xff] }
 0x20f   : > { %v1966_v58 = vmax.f32 %v1962_v3, 0.0  ;;  %v4727_v3 = vld [vmem:[%s7571_s3 + $0x798] sm:$0xf0]  ;;  %v4678_v4 = vor.u32 %v5272_v22, %v4677_v20  ;;  %v5366_v20 = vld [vmem:[%s7573_s5 + $0x128] sm:$0xff]  ;;  %v5337_v22 = vld [vmem:[%s7573_s5 + $0x40] sm:$0xff] }
 0x210   : > { %v5340_v8 = vld [vmem:[%s7573_s5 + $0x58] sm:$0xff]  ;;  %v5350_v47 = vld [vmem:[%s7573_s5 + $0xa8] sm:$0xff] }
 0x211   : > { %v7216_v44 = vpack.c.bf16 %v1966_v58, %v1964_v40  ;;  %v4730_v40 = vor.u32 %v5283_v29, %v4727_v3  ;;  %v4717_v58 = vld [vmem:[%s7571_s3 + $0x780] sm:$0xf]  ;;  %v5360_v59 = vld [vmem:[%s7573_s5 + $0xf8] sm:$0xff]  ;;  %v5371_v3 = vld [vmem:[%s7573_s5 + $0x150] sm:$0xff] }
 0x212   : > { %2690 = vmatpush.bf16.msra.mxu3 %v4766_v33  ;;  %2718 = vmatpush.bf16.msrb.mxu1 %v4770_v37  ;;  %v5270_v33 = vld [vmem:[%s7571_s3 + $0x724] sm:$0xf0]  ;;  %v5269_v37 = vld [vmem:[%s7571_s3 + $0x724] sm:$0xf] }
 0x213   : > { %2171 = vmatmul.bf16.vlgmr.msra.gmra.mxu2 %v7216_v44  ;;  %2199 = vmatmul.bf16.vlgmr.msrb.gmra.mxu0 %v7216_v44  ;;  %v4674_v43 = vor.u32 %v5269_v37, %v4671_v38  ;;  %v5370_v38 = vld [vmem:[%s7573_s5 + $0x148] sm:$0xff] }
 0x214   : > { %2675 = vmatpush.bf16.msra.mxu2 %v4710_v42  ;;  %2703 = vmatpush.bf16.msrb.mxu0 %v4714_v45  ;;  %v4719_v42 = vld [vmem:[%s7571_s3 + $0x788] sm:$0xf0]  ;;  %v4670_v45 = vor.u32 %v5270_v33, %v4669_v32  ;;  %v5364_v32 = vld [vmem:[%s7573_s5 + $0x118] sm:$0xff] }
 0x215   : > { %v4722_v53 = vor.u32 %v5281_v41, %v4719_v42  ;;  %v5352_v33 = vld [vmem:[%s7573_s5 + $0xb8] sm:$0xff]  ;;  %v5369_v42 = vld [vmem:[%s7573_s5 + $0x140] sm:$0xff] }
 0x216   : > { %2691 = vmatpush.bf16.msra.mxu3 %v4758_v36  ;;  %2719 = vmatpush.bf16.msrb.mxu1 %v4762_v49  ;;  %v4663_v36 = vld [vmem:[%s7571_s3 + $0x718] sm:$0xf0]  ;;  %v4718_v49 = vor.u32 %v5282_v14, %v4717_v58  ;;  %v5363_v58 = vld [vmem:[%s7573_s5 + $0x110] sm:$0xff] }
 0x217   : > { %v4666_v55 = vor.u32 %v5267_v48, %v4663_v36  ;;  %v5351_v14 = vld [vmem:[%s7573_s5 + $0xb0] sm:$0xff]  ;;  %v5356_v48 = vld [vmem:[%s7573_s5 + $0xd8] sm:$0xff] }
 0x218   : > { %2676 = vmatpush.bf16.msra.mxu2 %v4702_v57  ;;  %2704 = vmatpush.bf16.msrb.mxu0 %v4706_v60  ;;  %v5266_v57 = vld [vmem:[%s7571_s3 + $0x704] sm:$0xf0]  ;;  %v5265_v60 = vld [vmem:[%s7571_s3 + $0x704] sm:$0xf] }
 0x219   : > { %v4654_v62 = vor.u32 %v5266_v57, %v4653_v56  ;;  %v4658_v21 = vor.u32 %v5265_v60, %v4655_v61  ;;  %v5355_v57 = vld [vmem:[%s7573_s5 + $0xd0] sm:$0xff] }
 0x21a   : > { %2692 = vmatpush.bf16.msra.mxu3 %v4750_v63  ;;  %2720 = vmatpush.bf16.msrb.mxu1 %v4754_v2  ;;  %v5343_v63 = vld [vmem:[%s7573_s5 + $0x70] sm:$0xff]  ;;  %v5342_v2 = vld [vmem:[%s7573_s5 + $0x68] sm:$0xff] }
 0x21c   : > { %2677 = vmatpush.bf16.msra.mxu2 %v4694_v34  ;;  %2705 = vmatpush.bf16.msrb.mxu0 %v4698_v35  ;;  %v5375_v34 = vld [vmem:[%s7573_s5 + $0x170] sm:$0xff]  ;;  %v5333_v35 = vld [vmem:[%s7573_s5 + $0x20] sm:$0xff] }
 0x21d   : > { %2467 = vmatmul.bf16.vlgmr.msrb.gmra.mxu3 %v7176_v24  ;;  %2495 = vmatmul.bf16.vlgmr.msra.gmra.mxu1 %v7176_v24 }
 0x21e   : > { %2693 = vmatpush.bf16.msra.mxu3 %v4742_v13  ;;  %2721 = vmatpush.bf16.msrb.mxu1 %v4746_v39  ;;  %v5332_v13 = vld [vmem:[%s7573_s5 + $0x18] sm:$0xff]  ;;  %v5367_v39 = vld [vmem:[%s7573_s5 + $0x130] sm:$0xff] }
 0x220   : > { %2678 = vmatpush.bf16.msra.mxu2 %v4686_v17  ;;  %2706 = vmatpush.bf16.msrb.mxu0 %v4690_v18  ;;  %v5331_v17 = vld [vmem:[%s7573_s5 + $0x10] sm:$0xff] }
 0x222   : > { %2694 = vmatpush.bf16.msra.mxu3 %v4734_v25  ;;  %2722 = vmatpush.bf16.msrb.mxu1 %v4738_v26  ;;  %v5330_v25 = vld [vmem:[%s7573_s5 + $0x8] sm:$0xff] }
 0x223   : > { %2453 = vmatmul.bf16.vlgmr.msrb.gmra.mxu2 %v7216_v44  ;;  %2481 = vmatmul.bf16.vlgmr.msra.gmra.mxu0 %v7216_v44 }
 0x224   : > { %2679 = vmatpush.bf16.msra.mxu2 %v4678_v4  ;;  %2707 = vmatpush.bf16.msrb.mxu0 %v4682_v31  ;;  %v5359_v4 = vld [vmem:[%s7573_s5 + $0xf0] sm:$0xff]  ;;  %v5329_v31 = vld [vmem:[%s7573_s5] sm:$0xff] }
 0x226   : > { %2695 = vmatpush.bf16.msra.mxu3 %v4726_v19  ;;  %2723 = vmatpush.bf16.msrb.mxu1 %v4730_v40  ;;  %v5358_v19 = vld [vmem:[%s7573_s5 + $0xe8] sm:$0xff] }
 0x228   : > { %2680 = vmatpush.bf16.msra.mxu2 %v4670_v45  ;;  %2708 = vmatpush.bf16.msrb.mxu0 %v4674_v43  ;;  %v5357_v45 = vld [vmem:[%s7573_s5 + $0xe0] sm:$0xff] }
 0x22a   : > { %2696 = vmatpush.bf16.msra.mxu3 %v4718_v49  ;;  %2724 = vmatpush.bf16.msrb.mxu1 %v4722_v53 }
 0x22c   : > { %2681 = vmatpush.bf16.msra.mxu2 %v4662_v54  ;;  %2709 = vmatpush.bf16.msrb.mxu0 %v4666_v55  ;;  %v5361_v54 = vld [vmem:[%s7573_s5 + $0x100] sm:$0xff] }
 0x22d   : > { %2697 = vmatmul.bf16.vlgmr.msra.gmra.mxu3 %v7176_v24  ;;  %2725 = vmatmul.bf16.vlgmr.msrb.gmra.mxu1 %v7176_v24  ;;  %v5336_v24 = vld [vmem:[%s7573_s5 + $0x38] sm:$0xff]  ;;  %v5349_v55 = vld [vmem:[%s7573_s5 + $0xa0] sm:$0xff] }
 0x22e   : > { %2904 = vmatpush.bf16.msrb.mxu3 %v5344_v0  ;;  %3094 = vmatpush.bf16.msra.mxu1 %v5376_v6 }
 0x230   : > { %2682 = vmatpush.bf16.msra.mxu2 %v4654_v62  ;;  %2710 = vmatpush.bf16.msrb.mxu0 %v4658_v21  ;;  %v5348_v62 = vld [vmem:[%s7573_s5 + $0x98] sm:$0xff] }
 0x232   : > { %2905 = vmatpush.bf16.msrb.mxu3 %v5343_v63  ;;  %3095 = vmatpush.bf16.msra.mxu1 %v5375_v34  ;;  %v5354_v63 = vld [vmem:[%s7573_s5 + $0xc8] sm:$0xff] }
 0x233   : > { %2683 = vmatmul.bf16.vlgmr.msra.gmra.mxu2 %v7216_v44  ;;  %2711 = vmatmul.bf16.vlgmr.msrb.gmra.mxu0 %v7216_v44  ;;  %v5335_v44 = vld [vmem:[%s7573_s5 + $0x30] sm:$0xff] }
 0x234   : > { %2890 = vmatpush.bf16.msrb.mxu2 %v5336_v24  ;;  %3080 = vmatpush.bf16.msra.mxu0 %v5368_v10 }
 0x236   : > { %2906 = vmatpush.bf16.msrb.mxu3 %v5342_v2  ;;  %3096 = vmatpush.bf16.msra.mxu1 %v5374_v12  ;;  %v5347_v2 = vld [vmem:[%s7573_s5 + $0x90] sm:$0xff] }
 0x238   : > { %2891 = vmatpush.bf16.msrb.mxu2 %v5335_v44  ;;  %3081 = vmatpush.bf16.msra.mxu0 %v5367_v39 }
 0x23a   : > { %2907 = vmatpush.bf16.msrb.mxu3 %v5341_v5  ;;  %3097 = vmatpush.bf16.msra.mxu1 %v5373_v16  ;;  %v5345_v16 = vld [vmem:[%s7573_s5 + $0x80] sm:$0xff] }
 0x23c   : > { %2892 = vmatpush.bf16.msrb.mxu2 %v5334_v7  ;;  %3082 = vmatpush.bf16.msra.mxu0 %v5366_v20  ;;  %v5353_v7 = vld [vmem:[%s7573_s5 + $0xc0] sm:$0xff] }
 0x23e   : > { %2908 = vmatpush.bf16.msrb.mxu3 %v5340_v8  ;;  %3098 = vmatpush.bf16.msra.mxu1 %v5372_v30 }
 0x240   : > { %2893 = vmatpush.bf16.msrb.mxu2 %v5333_v35  ;;  %3083 = vmatpush.bf16.msra.mxu0 %v5365_v27 }
 0x242   : > { %2909 = vmatpush.bf16.msrb.mxu3 %v5339_v11  ;;  %3099 = vmatpush.bf16.msra.mxu1 %v5371_v3  ;;  %v5346_v11 = vld [vmem:[%s7573_s5 + $0x88] sm:$0xff] }
 0x244   : > { %2894 = vmatpush.bf16.msrb.mxu2 %v5332_v13  ;;  %3084 = vmatpush.bf16.msra.mxu0 %v5364_v32 }
 0x246   : > { %2910 = vmatpush.bf16.msrb.mxu3 %v5338_v15  ;;  %3100 = vmatpush.bf16.msra.mxu1 %v5370_v38 }
 0x248   : > { %2895 = vmatpush.bf16.msrb.mxu2 %v5331_v17  ;;  %3085 = vmatpush.bf16.msra.mxu0 %v5363_v58 }
 0x24a   : > { %2911 = vmatpush.bf16.msrb.mxu3 %v5337_v22  ;;  %3101 = vmatpush.bf16.msra.mxu1 %v5369_v42  ;;  %v4650_v22 = vld [vmem:[%s7572_s4 + $0x2] ss:$4 sm:$0x3] }
 0x24c   : > { %2896 = vmatpush.bf16.msrb.mxu2 %v5330_v25  ;;  %3086 = vmatpush.bf16.msra.mxu0 %v5362_v46 }
 0x24e   : > { %3224 = vmatpush.bf16.msra.mxu3 %v5360_v59 }
 0x250   : > { %2897 = vmatpush.bf16.msrb.mxu2 %v5329_v31  ;;  %3087 = vmatpush.bf16.msra.mxu0 %v5361_v54  ;;  %v2749_v31 = vperm.slane %v4650_v22, 1 }
 0x252   : > { %3225 = vmatpush.bf16.msra.mxu3 %v5359_v4 }
 0x254   : > { %3210 = vmatpush.bf16.msra.mxu2 %v5352_v33 }
 0x256   : > { %3226 = vmatpush.bf16.msra.mxu3 %v5358_v19 }
 0x258   : > { %3211 = vmatpush.bf16.msra.mxu2 %v5351_v14 }
 0x25a   : > { %3227 = vmatpush.bf16.msra.mxu3 %v5357_v45  ;;  %v2748_v45 = vperm.slane %v4650_v22, 0 }
 0x25c   : > { %3212 = vmatpush.bf16.msra.mxu2 %v5350_v47 }
 0x25e   : > { %3228 = vmatpush.bf16.msra.mxu3 %v5356_v48 }
 0x260   : > { %3213 = vmatpush.bf16.msra.mxu2 %v5349_v55 }
 0x262   : > { %3229 = vmatpush.bf16.msra.mxu3 %v5355_v57 }
 0x264   : > { %3214 = vmatpush.bf16.msra.mxu2 %v5348_v62 }
 0x266   : > { %3230 = vmatpush.bf16.msra.mxu3 %v5354_v63 }
 0x268   : > { %3215 = vmatpush.bf16.msra.mxu2 %v5347_v2 }
 0x26a   : > { %3231 = vmatpush.bf16.msra.mxu3 %v5353_v7 }
 0x26c   : > { %3216 = vmatpush.bf16.msra.mxu2 %v5346_v11 }
 0x270   : > { %3217 = vmatpush.bf16.msra.mxu2 %v5345_v16 }
 0x28a   : > { %v7402_v9 = vpop.f32.mrf.mxu1 }
 0x290   : > { %v7422_v50 = vpop.f32.mrf.mxu3  ;;  %v2200_v51 = vpop.f32.mrf.mxu0 }
 0x291   : > { %v2215_v56 = vadd.f32 %v7402_v9, %v2200_v51 }
 0x292   : > { %v2216_v18 = vpop.f32.mrf.mxu1 }
 0x293   : > { %v2504_v21 = vrot.slane %v2215_v56, 7 }
 0x296   : > { %v2172_v26 = vpop.f32.mrf.mxu2 }
 0x297   : > { %v2187_v44 = vadd.f32 %v7422_v50, %v2172_v26 }
 0x298   : > { %v2188_v28 = vpop.f32.mrf.mxu3  ;;  %v2202_v29 = vpop.f32.mrf.mxu0 }
 0x299   : > { %v2217_v36 = vadd.f32 %v2216_v18, %v2202_v29  ;;  %v2503_v12 = vrot.slane %v2187_v44, 7 }
 0x29a   : > { %v2496_v37 = vpop.f32.mrf.mxu1 }
 0x29b   : > { %v2506_v61 = vrot.slane %v2217_v36, 7 }
 0x29d   : > { %v2510_v5 = vsel %vm913_vm2, %v2506_v61, %v2504_v21 }
 0x29e   : > { %v2174_v40 = vpop.f32.mrf.mxu2  ;;  %v2512_v9 = vsel %vm6482_vm3, %v2510_v5, 0.0 }
 0x29f   : > { %v2189_v0 = vadd.f32 %v2188_v28, %v2174_v40  ;;  %v2508_v28 = vsel %vm913_vm2, %v2504_v21, %v2506_v61 }
 0x2a0   : > { %v2482_v41 = vpop.f32.mrf.mxu0  ;;  %v2468_v43 = vpop.f32.mrf.mxu3 }
 0x2a1   : > { %v2505_v8 = vrot.slane %v2189_v0, 7  ;;  %v2497_v39 = vadd.f32 %v2496_v37, %v2482_v41 }
 0x2a2   : > { %v2498_v49 = vpop.f32.mrf.mxu1 }
 0x2a3   : > { %v2509_v15 = vsel %vm913_vm2, %v2505_v8, %v2503_v12  ;;  %v2732_v17 = vrot.slane %v2497_v39, 1 }
 0x2a4   : > { %v2511_v30 = vsel %vm6482_vm3, %v2509_v15, 0.0 }
 0x2a6   : > { %v2454_v53 = vpop.f32.mrf.mxu2 }
 0x2a7   : > { %v2469_v26 = vadd.f32 %v2468_v43, %v2454_v53  ;;  %v2507_v43 = vsel %vm913_vm2, %v2503_v12, %v2505_v8 }
 0x2a8   : > { %v2484_v60 = vpop.f32.mrf.mxu0  ;;  %v2470_v24 = vpop.f32.mrf.mxu3 }
 0x2a9   : > { %v2499_v34 = vadd.f32 %v2498_v49, %v2484_v60  ;;  %v2731_v40 = vrot.slane %v2469_v26, 1 }
 0x2aa   : > { %v2726_v35 = vpop.f32.mrf.mxu1 }
 0x2ab   : > { %v2734_v50 = vrot.slane %v2499_v34, 1 }
 0x2ad   : > { %v2736_v27 = vsel %vm1146_vm4, %v2732_v17, %v2734_v50  ;;  %v2738_v3 = vsel %vm1146_vm4, %v2734_v50, %v2732_v17 }
 0x2ae   : > { %v2456_v6 = vpop.f32.mrf.mxu2  ;;  %v2742_v58 = vsel %vm6505_vm5, %v2738_v3, 0.0 }
 0x2af   : > { %v2471_v18 = vadd.f32 %v2470_v24, %v2456_v6 }
 0x2b0   : > { %v2712_v10 = vpop.f32.mrf.mxu0  ;;  %v2698_v20 = vpop.f32.mrf.mxu3 }
 0x2b1   : > { %v2713_v13 = vadd.f32 %v2712_v10, %v2512_v9  ;;  %v2733_v33 = vrot.slane %v2471_v18, 1 }
 0x2b2   : > { %v2728_v37 = vpop.f32.mrf.mxu1 }
 0x2b3   : > { %v2727_v51 = vadd.f32 %v2726_v35, %v2713_v13  ;;  %v2735_v42 = vsel %vm1146_vm4, %v2731_v40, %v2733_v33  ;;  %v2737_v47 = vsel %vm1146_vm4, %v2733_v33, %v2731_v40 }
 0x2b4   : > { %v2741_v57 = vsel %vm6505_vm5, %v2737_v47, 0.0 }
 0x2b5   : > { %v2744_v4 = vadd.f32 %v2736_v27, %v2727_v51 }
 0x2b6   : > { %v2684_v59 = vpop.f32.mrf.mxu2 }
 0x2b7   : > { %v2685_v25 = vadd.f32 %v2684_v59, %v2511_v30  ;;  %v2753_v14 = vadd.f32 %v2749_v31, %v2744_v4  ;;  %v5390_v30 = vld [vmem:[%s7574_s6] ss:$0 sm:$0xff] }
 0x2b8   : > { %v2714_v29 = vpop.f32.mrf.mxu0  ;;  %v2700_v53 = vpop.f32.mrf.mxu3 }
 0x2b9   : > { %v2715_v32 = vadd.f32 %v2714_v29, %v2508_v28  ;;  %v2699_v38 = vadd.f32 %v2698_v20, %v2685_v25  ;;  %v2757_v54 = vmax.f32 %v2753_v14, 0.0 }
 0x2bb   : > { %v2729_v19 = vadd.f32 %v2728_v37, %v2715_v32  ;;  %v2743_v48 = vadd.f32 %v2735_v42, %v2699_v38 }
 0x2bd   : > { %v2746_v41 = vadd.f32 %v2742_v58, %v2729_v19  ;;  %v2752_v60 = vadd.f32 %v2748_v45, %v2743_v48 }
 0x2be   : > { %v2686_v46 = vpop.f32.mrf.mxu2 }
 0x2bf   : > { %v2755_v36 = vadd.f32 %v2749_v31, %v2746_v41  ;;  %v2687_v49 = vadd.f32 %v2686_v46, %v2507_v43  ;;  %v2756_v0 = vmax.f32 %v2752_v60, 0.0 }
 0x2c1   : > { %v2759_v55 = vmax.f32 %v2755_v36, 0.0  ;;  %v2701_v56 = vadd.f32 %v2700_v53, %v2687_v49 }
 0x2c3   : > { %v2745_v61 = vadd.f32 %v2741_v57, %v2701_v56  ;;  %v2761_v62 = vpack.c.bf16 %v2759_v55, %v2757_v54 }
 0x2c5   : > { %v2754_v21 = vadd.f32 %v2748_v45, %v2745_v61  ;;  %2912 = vmatmul.bf16.vlgmr.msrb.gmra.mxu3 %v2761_v62  ;;  %3102 = vmatmul.bf16.vlgmr.msra.gmra.mxu1 %v2761_v62 }
 0x2c7   : > { %v2758_v63 = vmax.f32 %v2754_v21, 0.0 }
 0x2c9   : > { %v2760_v24 = vpack.c.bf16 %v2758_v63, %v2756_v0 }
 0x2cb   : > { %2898 = vmatmul.bf16.vlgmr.msrb.gmra.mxu2 %v2760_v24  ;;  %3088 = vmatmul.bf16.vlgmr.msra.gmra.mxu0 %v2760_v24 }
 0x2d5   : > { %3232 = vmatmul.bf16.vlgmr.msra.gmra.mxu3 %v2761_v62 }
 0x2db   : > { %3218 = vmatmul.bf16.vlgmr.msra.gmra.mxu2 %v2760_v24 }
 0x342   : > { %v3103_v6 = vpop.f32.mrf.mxu1 }
 0x348   : > { %v2913_v2 = vpop.f32.mrf.mxu3  ;;  %v3089_v44 = vpop.f32.mrf.mxu0 }
 0x349   : > { %v3104_v15 = vadd.f32 %v3103_v6, %v3089_v44 }
 0x34a   : > { %v3105_v10 = vpop.f32.mrf.mxu1 }
 0x34b   : > { %v3238_v20 = vrot.slane %v3104_v15, 1 }
 0x34e   : > { %v2899_v5 = vpop.f32.mrf.mxu2 }
 0x34f   : > { %v2914_v8 = vadd.f32 %v2913_v2, %v2899_v5 }
 0x350   : > { %v2915_v7 = vpop.f32.mrf.mxu3  ;;  %v3091_v35 = vpop.f32.mrf.mxu0 }
 0x351   : > { %v3108_v11 = vrot.slane %v2914_v8, 7  ;;  %v3106_v13 = vadd.f32 %v3105_v10, %v3091_v35 }
 0x353   : > { %v3239_v50 = vrot.slane %v3106_v13, 1 }
 0x355   : > { %v3240_v59 = vsel %vm1146_vm4, %v3238_v20, %v3239_v50  ;;  %v3241_v23 = vsel %vm1146_vm4, %v3239_v50, %v3238_v20 }
 0x356   : > { %v2901_v34 = vpop.f32.mrf.mxu2  ;;  %v3243_v32 = vsel %vm6505_vm5, %v3241_v23, 0.0 }
 0x357   : > { %v2916_v9 = vadd.f32 %v2915_v7, %v2901_v34 }
 0x358   : > { %v3233_v51 = vpop.f32.mrf.mxu3 }
 0x359   : > { %v3109_v12 = vrot.slane %v2916_v9, 7 }
 0x35b   : > { %v3111_v39 = vsel %vm913_vm2, %v3109_v12, %v3108_v11  ;;  %v3110_v27 = vsel %vm913_vm2, %v3108_v11, %v3109_v12 }
 0x35c   : > { %v3112_v16 = vsel %vm6482_vm3, %v3111_v39, 0.0 }
 0x35e   : > { %v3219_v17 = vpop.f32.mrf.mxu2 }
 0x35f   : > { %v3220_v18 = vadd.f32 %v3219_v17, %v3112_v16 }
 0x360   : > { %v3235_v4 = vpop.f32.mrf.mxu3 }
 0x361   : > { %v3234_v22 = vadd.f32 %v3233_v51, %v3220_v18 }
 0x363   : > { %v3244_v25 = vadd.f32 %v3240_v59, %v3234_v22 }
 0x365   : > { %v3250_v26 = vadd.f32 %v5390_v30, %v3244_v25 }
 0x366   : > { %v3221_v28 = vpop.f32.mrf.mxu2 }
 0x367   : > { %v5035_v29 = vmul.f32 -1.442695, %v3250_v26  ;;  %v3222_v3 = vadd.f32 %v3221_v28, %v3110_v27 }
 0x369   : > { %5391 = vpow2.f32 %v5035_v29  ;;  %v3236_v31 = vadd.f32 %v3235_v4, %v3222_v3 }
 0x36b   : > { %v3245_v33 = vadd.f32 %v3243_v32, %v3236_v31 }
 0x36d   : > { %v3251_v37 = vadd.f32 %v5390_v30, %v3245_v33 }
 0x36f   : > { %v5392_v38 = vpop.eup %5391  ;;  %v5036_v19 = vmul.f32 -1.442695, %v3251_v37 }
 0x370   : > { %v3258_v40 = vadd.f32 1.0, %v5392_v38 }
 0x371   : > { %5393 = vpow2.f32 %v5036_v19 }
 0x372   : > { %5395 = vrcp.f32 %v3258_v40  ;;  %vm3265_vm7 = vweird.f32 %v3258_v40  ;;  %v3271_v48 = vand.u32 2147483648, %v3258_v40  ;;  %v3269_v49 = vand.u32 2147483647, %v3258_v40 }
 0x374   : > { %v3272_v57 = vor.u32 1.1754944e-38, %v3271_v48  ;;  %vm3270_vm12 = vcmp.eq.f32.partialorder %v3269_v49, 8.507059e+37 }
 0x377   : > { %v5394_v58 = vpop.eup %5393 }
 0x378   : > { %v5396_v14 = vpop.eup %5395  ;;  %v3259_v41 = vadd.f32 1.0, %v5394_v58 }
 0x379   : > { %v3261_v1 = vmul.f32 %v5396_v14, %v3258_v40  ;;  %vm3266_vm6 = vweird.f32 %v5396_v14 }
 0x37a   : > { %5397 = vrcp.f32 %v3259_v41  ;;  %v3286_v36 = vand.u32 2147483648, %v3259_v41  ;;  %v3284_v54 = vand.u32 2147483647, %v3259_v41  ;;  %vm3267_vm9 = vmor %vm3265_vm7, %vm3266_vm6  ;;  %vm3280_vm10 = vweird.f32 %v3259_v41 }
 0x37b   : > { %v3262_v42 = vsub.f32 1.0, %v3261_v1 }
 0x37c   : > { %v3287_v60 = vor.u32 1.1754944e-38, %v3286_v36  ;;  %vm3285_vm13 = vcmp.eq.f32.partialorder %v3284_v54, 8.507059e+37 }
 0x37d   : > { %v3263_v45 = vmul.f32 %v5396_v14, %v3262_v42 }
 0x37f   : > { %v3264_v47 = vadd.f32 %v5396_v14, %v3263_v45 }
 0x380   : > { %v5398_v43 = vpop.eup %5397 }
 0x381   : > { %v3276_v46 = vmul.f32 %v5398_v43, %v3259_v41  ;;  %vm3281_vm8 = vweird.f32 %v5398_v43  ;;  %v3268_v55 = vsel %vm3267_vm9, %v5396_v14, %v3264_v47 }
 0x382   : > { %vm3282_vm11 = vmor %vm3280_vm10, %vm3281_vm8  ;;  %v3273_v62 = vsel %vm3270_vm12, %v3272_v57, %v3268_v55 }
 0x383   : > { %v3277_v52 = vsub.f32 1.0, %v3276_v46 }
 0x385   : > { %v3278_v53 = vmul.f32 %v5398_v43, %v3277_v52 }
 0x387   : > { %v3279_v56 = vadd.f32 %v5398_v43, %v3278_v53 }
 0x389   : > { %v3283_v61 = vsel %vm3282_vm11, %v5398_v43, %v3279_v56 }
 0x38a   : > { %v3288_v21 = vsel %vm3285_vm13, %v3287_v60, %v3283_v61 }
 0x38b   : > { %v5380_v0 = vpack.c.bf16 %v3288_v21, %v3273_v62 }
 0x38d   : > { %5381 = vst [vmem:[%s280_s17] sm:$0xff] %v5380_v0  }
 0x38e PF: > { %s17_s24 = sadd.s32 1, %s5405_s24  }
 0x38f   : > { %p14_p4 = scmp.ge.s32.totalorder %s17_s24, 4  }
 0x391   :  { %16 = sbr.rel (!%p14_p4) target bundleno = 1 (0x1), region = 90 }

</bundles_post_ra>
